<compile_context>
chip_gen: v5e
topology: v5e:2x2
jax: 0.10.0
libtpu: 0.0.40
codegen_flags: <defaults>
</compile_context>

<pallas_src>
import numpy as np
import jax
import jax.numpy as jnp
from jax.experimental import pallas as pl
from jax.experimental.pallas import tpu as pltpu

d_k = d_v = 64
n_heads = 8
d_model = 768

_SCALE = 1.0 / np.sqrt(d_k)
_NEG_INF = -1000000000.0      # exact constant used by masked_fill_
_LN_EPS = 1e-5                # torch.nn.LayerNorm default
_VMEM_LIMIT = 48 * 1024 * 1024


def _pick_tile(n, cap=256):
    """Largest tile <= cap dividing n (power-of-two steps, >= 8), else n."""
    if n <= cap:
        return n
    t = cap
    while t >= 8:
        if n % t == 0:
            return t
        t //= 2
    return n


# --------------------------------------------------------------------------
# Fused scaled-dot-product attention (2 heads per grid step, q-tiled)
# --------------------------------------------------------------------------
def _attn_kernel(q_ref, k_ref, v_ref, mask_ref, ctx_ref, *opt_attn):
    # q_ref: (1, 2, tq, Dk) | k_ref/v_ref: (1, 2, S_k, D) | mask_ref: (1, tq, S_k)
    # ctx_ref: (1, tq, 2*Dv) packed [head0 | head1]
    # opt_attn (optional): (1, 2, tq, S_k)
    q = (q_ref[0] * _SCALE).astype(jnp.bfloat16)   # scale folded into Q
    k = k_ref[0].astype(jnp.bfloat16)
    v = v_ref[0].astype(jnp.bfloat16)
    mask = mask_ref[0]                             # [tq, S_k] bool, True = mask out

    # scores[h, i, j] = q[h, i, :] . k[h, j, :]  (batched over the 2 packed
    # heads; contraction on last dims -> no k.T materialisation)
    scores = jax.lax.dot_general(
        q, k,
        dimension_numbers=(((2,), (2,)), ((0,), (0,))),
        preferred_element_type=jnp.float32)        # [2, tq, S_k] f32
    scores = jnp.where(mask[None, :, :], jnp.float32(_NEG_INF), scores)

    # numerically stable softmax, all f32; EUP reciprocal instead of VALU divide
    m = jnp.max(scores, axis=-1, keepdims=True)
    e = jnp.exp(scores - m)
    denom = jnp.sum(e, axis=-1, keepdims=True)
    attn = e * pl.reciprocal(denom, approx=True)

    ctx = jax.lax.dot_general(
        attn.astype(jnp.bfloat16), v,
        dimension_numbers=(((2,), (1,)), ((0,), (0,))),
        preferred_element_type=jnp.float32)        # [2, tq, Dv] f32

    # pack the two heads side-by-side -> one lane-dense 128-wide store
    ctx_ref[0] = jnp.concatenate([ctx[0], ctx[1]], axis=-1).astype(ctx_ref.dtype)
    if opt_attn:
        opt_attn[0][0] = attn.astype(opt_attn[0].dtype)


def scaled_dot_product_attention(Q, K, V, attn_mask, *, return_attn=True):
    """Fused SDPA.

    Q/K/V: [B, H, S, 64]; attn_mask: bool [B, S_q, S_k] (True = mask out).
    Returns (context [B, S_q, H*d_v] in concat-heads layout,
             attn [B, H, S_q, S_k] or None).
    """
    B, H, S_q, Dk = Q.shape
    S_k = K.shape[2]
    Dv = V.shape[3]
    assert H % 2 == 0 and (2 * Dv) % 128 == 0, (
        "kernel packs 2 heads per grid step for lane-dense 128-wide ctx stores")

    tq = _pick_tile(S_q)
    grid = (B, H // 2, S_q // tq)

    in_specs = [
        pl.BlockSpec((1, 2, tq, Dk), lambda b, h, q: (b, h, q, 0)),   # Q
        pl.BlockSpec((1, 2, S_k, Dk), lambda b, h, q: (b, h, 0, 0)),  # K
        pl.BlockSpec((1, 2, S_k, Dv), lambda b, h, q: (b, h, 0, 0)),  # V
        pl.BlockSpec((1, tq, S_k), lambda b, h, q: (b, q, 0)),        # mask (no head dim)
    ]
    out_shapes = [jax.ShapeDtypeStruct((B, S_q, H * Dv), Q.dtype)]
    out_specs = [pl.BlockSpec((1, tq, 2 * Dv), lambda b, h, q: (b, q, h))]
    if return_attn:
        out_shapes.append(jax.ShapeDtypeStruct((B, H, S_q, S_k), jnp.float32))
        out_specs.append(pl.BlockSpec((1, 2, tq, S_k), lambda b, h, q: (b, h, q, 0)))

    outs = pl.pallas_call(
        _attn_kernel,
        out_shape=tuple(out_shapes),
        grid_spec=pltpu.PrefetchScalarGridSpec(
            num_scalar_prefetch=0,
            grid=grid,
            in_specs=in_specs,
            out_specs=out_specs,
        ),
        compiler_params=pltpu.CompilerParams(
            dimension_semantics=("parallel", "parallel", "arbitrary"),
            vmem_limit_bytes=_VMEM_LIMIT),
    )(Q, K, V, attn_mask)

    if return_attn:
        ctx, attn = outs
        return ctx, attn
    (ctx,) = outs
    return ctx, None


# --------------------------------------------------------------------------
# Input projections: y = x @ W + b
# --------------------------------------------------------------------------
def _linear_kernel(x_ref, w_ref, b_ref, o_ref):
    o_ref[...] = (jnp.dot(x_ref[...], w_ref[...],
                          preferred_element_type=jnp.float32)
                  + b_ref[...]).astype(o_ref.dtype)


def _linear(x, w, b):
    R, Din = x.shape
    Dout = w.shape[1]
    tm = _pick_tile(R)
    return pl.pallas_call(
        _linear_kernel,
        out_shape=jax.ShapeDtypeStruct((R, Dout), x.dtype),
        grid_spec=pltpu.PrefetchScalarGridSpec(
            num_scalar_prefetch=0,
            grid=(R // tm,),
            in_specs=[
                pl.BlockSpec((tm, Din), lambda i: (i, 0)),
                pl.BlockSpec((Din, Dout), lambda i: (0, 0)),
                pl.BlockSpec((1, Dout), lambda i: (0, 0)),
            ],
            out_specs=pl.BlockSpec((tm, Dout), lambda i: (i, 0)),
        ),
        compiler_params=pltpu.CompilerParams(
            dimension_semantics=("parallel",),
            vmem_limit_bytes=_VMEM_LIMIT),
    )(x, w, b.reshape(1, Dout))


# --------------------------------------------------------------------------
# Fused output projection + residual add + LayerNorm
# --------------------------------------------------------------------------
def _out_ln_kernel(ctx_ref, res_ref, w_ref, b_ref, g_ref, beta_ref, o_ref):
    y = (jnp.dot(ctx_ref[...], w_ref[...], preferred_element_type=jnp.float32)
         + b_ref[...] + res_ref[...])
    mu = jnp.mean(y, axis=-1, keepdims=True)
    c = y - mu
    var = jnp.mean(c * c, axis=-1, keepdims=True)
    yn = c * jax.lax.rsqrt(var + _LN_EPS)
    o_ref[...] = (yn * g_ref[...] + beta_ref[...]).astype(o_ref.dtype)


def _out_proj_layernorm(ctx, residual, w_o, b_o, ln_g, ln_b):
    R, Dh = ctx.shape
    Dm = w_o.shape[1]
    tm = _pick_tile(R)
    return pl.pallas_call(
        _out_ln_kernel,
        out_shape=jax.ShapeDtypeStruct((R, Dm), residual.dtype),
        grid_spec=pltpu.PrefetchScalarGridSpec(
            num_scalar_prefetch=0,
            grid=(R // tm,),
            in_specs=[
                pl.BlockSpec((tm, Dh), lambda i: (i, 0)),
                pl.BlockSpec((tm, Dm), lambda i: (i, 0)),
                pl.BlockSpec((Dh, Dm), lambda i: (0, 0)),
                pl.BlockSpec((1, Dm), lambda i: (0, 0)),
                pl.BlockSpec((1, Dm), lambda i: (0, 0)),
                pl.BlockSpec((1, Dm), lambda i: (0, 0)),
            ],
            out_specs=pl.BlockSpec((tm, Dm), lambda i: (i, 0)),
        ),
        compiler_params=pltpu.CompilerParams(
            dimension_semantics=("parallel",),
            vmem_limit_bytes=_VMEM_LIMIT),
    )(ctx, residual, w_o, b_o.reshape(1, Dm), ln_g.reshape(1, Dm),
      ln_b.reshape(1, Dm))


# --------------------------------------------------------------------------
# Full MultiHeadAttention forward
# --------------------------------------------------------------------------
def multi_head_attention(params, Q, K, V, attn_mask, *, return_attn=True):
    """Pallas equivalent of MultiHeadAttention.forward.

    Q/K/V: [B, S, d_model]; attn_mask: bool [B, S_q, S_k] (True = mask out).
    Returns (LayerNorm(out_proj(context) + Q), attn).
    """
    B, S_q, Dm = Q.shape
    S_k = K.shape[1]

    q_s = _linear(Q.reshape(B * S_q, Dm), params["w_q"], params["b_q"])
    k_s = _linear(K.reshape(B * S_k, Dm), params["w_k"], params["b_k"])
    v_s = _linear(V.reshape(B * S_k, Dm), params["w_v"], params["b_v"])

    q_s = q_s.reshape(B, S_q, n_heads, d_k).transpose(0, 2, 1, 3)
    k_s = k_s.reshape(B, S_k, n_heads, d_k).transpose(0, 2, 1, 3)
    v_s = v_s.reshape(B, S_k, n_heads, d_v).transpose(0, 2, 1, 3)

    ctx, attn = scaled_dot_product_attention(q_s, k_s, v_s, attn_mask,
                                             return_attn=return_attn)
    # ctx is already [B, S_q, n_heads*d_v] (heads concatenated by the kernel)
    out = _out_proj_layernorm(ctx.reshape(B * S_q, n_heads * d_v),
                              Q.reshape(B * S_q, Dm),
                              params["w_o"], params["b_o"],
                              params["ln_gamma"], params["ln_beta"])
    return out.reshape(B, S_q, Dm), attn


# --------------------------------------------------------------------------
# Pure-JAX f32 reference (mirrors the PyTorch module)
# --------------------------------------------------------------------------
def _reference(params, Q, K, V, attn_mask):
    B, S, _ = Q.shape
    q_s = (Q @ params["w_q"] + params["b_q"]).reshape(B, S, n_heads, d_k).transpose(0, 2, 1, 3)
    k_s = (K @ params["w_k"] + params["b_k"]).reshape(B, S, n_heads, d_k).transpose(0, 2, 1, 3)
    v_s = (V @ params["w_v"] + params["b_v"]).reshape(B, S, n_heads, d_v).transpose(0, 2, 1, 3)
    mask4 = jnp.broadcast_to(attn_mask[:, None, :, :], (B, n_heads, S, S))
    scores = jnp.einsum("bhqd,bhkd->bhqk", q_s, k_s) / np.sqrt(d_k)
    scores = jnp.where(mask4, _NEG_INF, scores)
    attn = jax.nn.softmax(scores, axis=-1)
    ctx = jnp.einsum("bhqk,bhkd->bhqd", attn, v_s)
    ctx = ctx.transpose(0, 2, 1, 3).reshape(B, S, n_heads * d_v)
    y = ctx @ params["w_o"] + params["b_o"] + Q
    mu = y.mean(-1, keepdims=True)
    var = ((y - mu) ** 2).mean(-1, keepdims=True)
    y = (y - mu) / jnp.sqrt(var + _LN_EPS) * params["ln_gamma"] + params["ln_beta"]
    return y, attn


if __name__ == "__main__":
    B, S = 2, 8
    key = jax.random.PRNGKey(0)
    ks = jax.random.split(key, 9)

    x = jax.random.normal(ks[0], (B, S, d_model), dtype=jnp.float32)

    def w_init(k, shape, fan_in):
        return jax.random.normal(k, shape, jnp.float32) / np.sqrt(fan_in)

    params = {
        "w_q": w_init(ks[1], (d_model, n_heads * d_k), d_model),
        "b_q": 0.01 * jax.random.normal(ks[2], (n_heads * d_k,), jnp.float32),
        "w_k": w_init(ks[3], (d_model, n_heads * d_k), d_model),
        "b_k": 0.01 * jax.random.normal(ks[4], (n_heads * d_k,), jnp.float32),
        "w_v": w_init(ks[5], (d_model, n_heads * d_v), d_model),
        "b_v": 0.01 * jax.random.normal(ks[6], (n_heads * d_v,), jnp.float32),
        "w_o": w_init(ks[7], (n_heads * d_v, d_model), n_heads * d_v),
        "b_o": 0.01 * jax.random.normal(ks[8], (d_model,), jnp.float32),
        "ln_gamma": jnp.ones((d_model,), jnp.float32),
        "ln_beta": jnp.zeros((d_model,), jnp.float32),
    }

    # Padding-style mask: key positions >= 6 masked out (True == mask), passed
    # in the compact [B, S_q, S_k] form; the kernel broadcasts across heads.
    attn_mask = jnp.broadcast_to((jnp.arange(S) >= 6)[None, None, :], (B, S, S))

    out, attn = multi_head_attention(params, x, x, x, attn_mask)
    out = jax.block_until_ready(out)
    attn = jax.block_until_ready(attn)

    out_ref, attn_ref = _reference(params, x, x, x, attn_mask)
    # bf16 MXU inputs (f32 accumulation) vs. the pure-f32 reference -> loose tol.
    assert jnp.allclose(attn, attn_ref, atol=3e-2, rtol=3e-2), "attn mismatch"
    assert jnp.allclose(out, out_ref, atol=3e-2, rtol=3e-2), "output mismatch"

    print("KERNEL_OK")
</pallas_src>

<mosaic_0001>
module attributes {stable_mosaic.version = 11 : i64} {
  func.func @_linear_kernel(%arg0: i32, %arg1: memref<16x768xf32, #tpu.memory_space<vmem>>, %arg2: memref<768x512xf32, #tpu.memory_space<vmem>>, %arg3: memref<1x512xf32, #tpu.memory_space<vmem>>, %arg4: memref<16x512xf32, #tpu.memory_space<vmem>>) attributes {dimension_semantics = [#tpu.dimension_semantics<parallel>], iteration_bounds = array<i64: 1>, scalar_prefetch = 0 : i64, scratch_operands = 0 : i64, tpu.core_type = #tpu.core_type<tc>, window_params = [{transform_indices = @transform_0, window_bounds = array<i64: 16, 768>}, {pipeline_mode = #tpu.pipeline_mode<synchronous>, transform_indices = @transform_1, window_bounds = array<i64: 768, 512>}, {pipeline_mode = #tpu.pipeline_mode<synchronous>, transform_indices = @transform_2, window_bounds = array<i64: 1, 512>}, {transform_indices = @transform_3, window_bounds = array<i64: 16, 512>}]} {
    %c0 = arith.constant 0 : index
    %c0_0 = arith.constant 0 : index
    %0 = vector.load %arg1[%c0, %c0_0] : memref<16x768xf32, #tpu.memory_space<vmem>>, vector<16x768xf32>
    %c0_1 = arith.constant 0 : index
    %c0_2 = arith.constant 0 : index
    %1 = vector.load %arg2[%c0_1, %c0_2] : memref<768x512xf32, #tpu.memory_space<vmem>>, vector<768x512xf32>
    %cst = arith.constant dense<0.000000e+00> : vector<16x512xf32>
    %2 = tpu.matmul %0, %1, %cst {dimension_numbers = #tpu.dot_dimension_numbers<[1], [0], [0], [1], [0, 0, 1, 1], [], []>} : vector<16x768xf32>, vector<768x512xf32>, vector<16x512xf32> -> vector<16x512xf32>
    %c0_3 = arith.constant 0 : index
    %c0_4 = arith.constant 0 : index
    %3 = vector.load %arg3[%c0_3, %c0_4] : memref<1x512xf32, #tpu.memory_space<vmem>>, vector<1x512xf32>
    %4 = vector.broadcast %3 : vector<1x512xf32> to vector<16x512xf32>
    %5 = arith.addf %2, %4 : vector<16x512xf32>
    %c0_5 = arith.constant 0 : index
    %c0_6 = arith.constant 0 : index
    %6 = vector.load %arg4[%c0_5, %c0_6] : memref<16x512xf32, #tpu.memory_space<vmem>>, vector<16x512xf32>
    tpu.vector_store %arg4[%c0_5, %c0_6], %5 {strides = array<i32>} : memref<16x512xf32, #tpu.memory_space<vmem>>, vector<16x512xf32>,
    return
  }
  func.func @transform_0(%arg0: i32) -> (i32, i32) {
    %c0_i32 = arith.constant 0 : i32
    %c0_i32_0 = arith.constant 0 : i32
    return %arg0, %c0_i32 : i32, i32
  }
  func.func @transform_1(%arg0: i32) -> (i32, i32) {
    %c0_i32 = arith.constant 0 : i32
    %c0_i32_0 = arith.constant 0 : i32
    %c0_i32_1 = arith.constant 0 : i32
    return %c0_i32, %c0_i32_0 : i32, i32
  }
  func.func @transform_2(%arg0: i32) -> (i32, i32) {
    %c0_i32 = arith.constant 0 : i32
    %c0_i32_0 = arith.constant 0 : i32
    %c0_i32_1 = arith.constant 0 : i32
    return %c0_i32, %c0_i32_0 : i32, i32
  }
  func.func @transform_3(%arg0: i32) -> (i32, i32) {
    %c0_i32 = arith.constant 0 : i32
    %c0_i32_0 = arith.constant 0 : i32
    return %arg0, %c0_i32 : i32, i32
  }
}

</mosaic_0001>

<bundles_post_ra>
// kernel: tpu_custom_call.1
= control target key start
LH: loop header
LB: loop body
LE: loop exit
PB: predicated region body
PF: predicated region fallthrough
CT: control target
= control target key end

     0   :  { %8 = vsyncpa [#allocation3], 0  ;;  %s1290_s0 = inlined_call_operand.hbm [shape: f32[16,768], index: 0, kind: input, shape index: {}]   ;;  %s1291_s1 = inlined_call_operand.hbm [shape: f32[768,512], index: 1, kind: input, shape index: {}]   ;;  %s1292_s2 = inlined_call_operand.hbm [shape: f32[1,512], index: 2, kind: input, shape index: {}]   ;;  %s1293_s3 = inlined_call_operand.hbm [shape: f32[16,512], index: 3, kind: output, shape index: {}]  }
   0x1   :  { %9 = vsyncpa [#allocation6], 0  ;;  %s28_s14 = sshll.u32 %s1291_s1, 4  ;;  %s29_s14 = int_to_ptr.hbm [resolvable:$true] %s28_s14 }
   0x2   :  { %10 = vsyncpa [#allocation4], 0  ;;  %s1165_s15 = smov [#allocation5]   ;;  %s15_s19 = sshll.u32 %s1290_s0, 4  ;;  %s16_s19 = int_to_ptr.hbm [resolvable:$true] %s15_s19 }
   0x3   :  { %s30_s16 = sshll.u32 %s1165_s15, 4  ;;  %s1166_s20 = smov 512   ;;  %s31_s16 = int_to_ptr.vmem [resolvable:$true] %s30_s16 }
   0x4   :  { %s1167_s21 = smov 32   ;;  %s1168_s22 = smov [#allocation2]  }
   0x5   :  { %36 = dma.hbm_to_vmem [thread:$0]  %s29_s14, 49152, %s31_s16, [#allocation6], %s1166_s20, %s1166_s20, %s1167_s21  }
   0x6   :  { %s17_s23 = sshll.u32 %s1168_s22, 4  ;;  %s1169_s1 = smov 768   ;;  %s18_s23 = int_to_ptr.vmem [resolvable:$true] %s17_s23 }
   0x7   :  { %s1170_s24 = smov 48   ;;  %s42_s27 = sshll.u32 %s1292_s2, 4  ;;  %s43_s27 = int_to_ptr.hbm [resolvable:$true] %s42_s27 }
   0x8   :  { %23 = dma.hbm_to_vmem [thread:$0]  %s16_s19, 1536, %s18_s23, [#allocation3], %s1169_s1, %s1169_s1, %s1170_s24  }
   0x9   :  { %s1171_s28 = smov [#allocation7]  }
   0xa   :  { %s44_s0 = sshll.u32 %s1171_s28, 4  ;;  %s45_s0 = int_to_ptr.vmem [resolvable:$true] %s44_s0 }
   0xb   :  { %47 = dma.hbm_to_vmem [thread:$0]  %s43_s27, 64, %s45_s0, [#allocation6]  }
   0xc   :  { %1159 = dma.done.wait [#allocation3], 1536  }
   0xd   :  { %1160 = vsyncadd [#allocation3], 4294965760 }
   0xe   :  { %1161 = dma.done.wait [#allocation6], 49216  }
   0xf   :  { %1162 = vsyncadd [#allocation6], 4294918080  ;;  %v132_v0 = vld [vmem:[#allocation5 + $0x1e0] sm:$0xff]  ;;  %v133_v63 = vld [vmem:[#allocation5 + $0x1e8] sm:$0xff]  ;;  %s1172_s2 = smov [#allocation8]   ;;  %s1032_s5 = sshll.u32 %s1293_s3, 4  ;;  %s1033_s5 = int_to_ptr.hbm [resolvable:$true] %s1032_s5 }
  0x10   :  { %v260_v1 = vld [vmem:[#allocation5 + $0x5e0] sm:$0xff]  ;;  %466 = vmatpush.msra.mxu0 %v132_v0  ;;  %s1030_s29 = sshll.u32 %s1172_s2, 4  ;;  %s1031_s29 = int_to_ptr.vmem [resolvable:$true] %s1030_s29 }
  0x11   :  { %v128_v2 = vld [vmem:[#allocation5 + $0x1c0] sm:$0xff]  ;;  %512 = vmatpush.msra.mxu2 %v260_v1 }
  0x12   :  { %v196_v3 = vld [vmem:[#allocation5 + $0x3e0] sm:$0xff]  ;;  %467 = vmatpush.msra.mxu0 %v128_v2 }
  0x13   :  { %v256_v4 = vld [vmem:[#allocation5 + $0x5c0] sm:$0xff]  ;;  %489 = vmatpush.msra.mxu1 %v196_v3 }
  0x14   :  { %v324_v5 = vld [vmem:[#allocation5 + $0x7e0] sm:$0xff]  ;;  %513 = vmatpush.msra.mxu2 %v256_v4  ;;  %v129_v4 = vld [vmem:[#allocation5 + $0x1c8] sm:$0xff] }
  0x15   :  { %535 = vmatpush.msra.mxu3 %v324_v5  ;;  %v124_v6 = vld [vmem:[#allocation5 + $0x1a0] sm:$0xff]  ;;  %v197_v5 = vld [vmem:[#allocation5 + $0x3e8] sm:$0xff] }
  0x16   :  { %v192_v7 = vld [vmem:[#allocation5 + $0x3c0] sm:$0xff]  ;;  %468 = vmatpush.msra.mxu0 %v124_v6 }
  0x17   :  { %v252_v8 = vld [vmem:[#allocation5 + $0x5a0] sm:$0xff]  ;;  %490 = vmatpush.msra.mxu1 %v192_v7 }
  0x18   :  { %v320_v9 = vld [vmem:[#allocation5 + $0x7c0] sm:$0xff]  ;;  %514 = vmatpush.msra.mxu2 %v252_v8  ;;  %v125_v8 = vld [vmem:[#allocation5 + $0x1a8] sm:$0xff] }
  0x19   :  { %v188_v10 = vld [vmem:[#allocation5 + $0x3a0] sm:$0xff]  ;;  %536 = vmatpush.msra.mxu3 %v320_v9  ;;  %v193_v9 = vld [vmem:[#allocation5 + $0x3c8] sm:$0xff] }
  0x1a   :  { %v120_v11 = vld [vmem:[#allocation5 + $0x180] sm:$0xff]  ;;  %491 = vmatpush.msra.mxu1 %v188_v10 }
  0x1b   :  { %v248_v12 = vld [vmem:[#allocation5 + $0x580] sm:$0xff]  ;;  %469 = vmatpush.msra.mxu0 %v120_v11 }
  0x1c   :  { %v316_v13 = vld [vmem:[#allocation5 + $0x7a0] sm:$0xff]  ;;  %515 = vmatpush.msra.mxu2 %v248_v12  ;;  %v121_v12 = vld [vmem:[#allocation5 + $0x188] sm:$0xff] }
  0x1d   :  { %v184_v14 = vld [vmem:[#allocation5 + $0x380] sm:$0xff]  ;;  %537 = vmatpush.msra.mxu3 %v316_v13  ;;  %v189_v13 = vld [vmem:[#allocation5 + $0x3a8] sm:$0xff] }
  0x1e   :  { %v312_v15 = vld [vmem:[#allocation5 + $0x780] sm:$0xff]  ;;  %492 = vmatpush.msra.mxu1 %v184_v14 }
  0x1f   :  { %v116_v16 = vld [vmem:[#allocation5 + $0x160] sm:$0xff]  ;;  %538 = vmatpush.msra.mxu3 %v312_v15 }
  0x20   :  { %v244_v17 = vld [vmem:[#allocation5 + $0x560] sm:$0xff]  ;;  %470 = vmatpush.msra.mxu0 %v116_v16  ;;  %v117_v16 = vld [vmem:[#allocation5 + $0x168] sm:$0xff] }
  0x21   :  { %v180_v18 = vld [vmem:[#allocation5 + $0x360] sm:$0xff]  ;;  %516 = vmatpush.msra.mxu2 %v244_v17  ;;  %v185_v17 = vld [vmem:[#allocation5 + $0x388] sm:$0xff] }
  0x22   :  { %v308_v19 = vld [vmem:[#allocation5 + $0x760] sm:$0xff]  ;;  %493 = vmatpush.msra.mxu1 %v180_v18 }
  0x23   :  { %v112_v20 = vld [vmem:[#allocation5 + $0x140] sm:$0xff]  ;;  %539 = vmatpush.msra.mxu3 %v308_v19 }
  0x24   :  { %v240_v21 = vld [vmem:[#allocation5 + $0x540] sm:$0xff]  ;;  %471 = vmatpush.msra.mxu0 %v112_v20  ;;  %v113_v20 = vld [vmem:[#allocation5 + $0x148] sm:$0xff] }
  0x25   :  { %v176_v22 = vld [vmem:[#allocation5 + $0x340] sm:$0xff]  ;;  %517 = vmatpush.msra.mxu2 %v240_v21  ;;  %v181_v21 = vld [vmem:[#allocation5 + $0x368] sm:$0xff] }
  0x26   :  { %v304_v23 = vld [vmem:[#allocation5 + $0x740] sm:$0xff]  ;;  %494 = vmatpush.msra.mxu1 %v176_v22 }
  0x27   :  { %v108_v24 = vld [vmem:[#allocation5 + $0x120] sm:$0xff]  ;;  %540 = vmatpush.msra.mxu3 %v304_v23 }
  0x28   :  { %v236_v25 = vld [vmem:[#allocation5 + $0x520] sm:$0xff]  ;;  %472 = vmatpush.msra.mxu0 %v108_v24  ;;  %v109_v24 = vld [vmem:[#allocation5 + $0x128] sm:$0xff] }
  0x29   :  { %v172_v26 = vld [vmem:[#allocation5 + $0x320] sm:$0xff]  ;;  %518 = vmatpush.msra.mxu2 %v236_v25  ;;  %v177_v25 = vld [vmem:[#allocation5 + $0x348] sm:$0xff] }
  0x2a   :  { %v300_v27 = vld [vmem:[#allocation5 + $0x720] sm:$0xff]  ;;  %495 = vmatpush.msra.mxu1 %v172_v26 }
  0x2b   :  { %v104_v28 = vld [vmem:[#allocation5 + $0x100] sm:$0xff]  ;;  %541 = vmatpush.msra.mxu3 %v300_v27 }
  0x2c   :  { %v232_v29 = vld [vmem:[#allocation5 + $0x500] sm:$0xff]  ;;  %473 = vmatpush.msra.mxu0 %v104_v28  ;;  %v105_v28 = vld [vmem:[#allocation5 + $0x108] sm:$0xff] }
  0x2d   :  { %v168_v30 = vld [vmem:[#allocation5 + $0x300] sm:$0xff]  ;;  %519 = vmatpush.msra.mxu2 %v232_v29  ;;  %v173_v29 = vld [vmem:[#allocation5 + $0x328] sm:$0xff] }
  0x2e   :  { %v296_v31 = vld [vmem:[#allocation5 + $0x700] sm:$0xff]  ;;  %496 = vmatpush.msra.mxu1 %v168_v30 }
  0x2f   :  { %v100_v32 = vld [vmem:[#allocation5 + $0xe0] sm:$0xff]  ;;  %542 = vmatpush.msra.mxu3 %v296_v31 }
  0x30   :  { %v228_v33 = vld [vmem:[#allocation5 + $0x4e0] sm:$0xff]  ;;  %474 = vmatpush.msra.mxu0 %v100_v32  ;;  %v101_v32 = vld [vmem:[#allocation5 + $0xe8] sm:$0xff] }
  0x31   :  { %v164_v34 = vld [vmem:[#allocation5 + $0x2e0] sm:$0xff]  ;;  %520 = vmatpush.msra.mxu2 %v228_v33  ;;  %v169_v33 = vld [vmem:[#allocation5 + $0x308] sm:$0xff] }
  0x32   :  { %v292_v35 = vld [vmem:[#allocation5 + $0x6e0] sm:$0xff]  ;;  %497 = vmatpush.msra.mxu1 %v164_v34 }
  0x33   :  { %v96_v36 = vld [vmem:[#allocation5 + $0xc0] sm:$0xff]  ;;  %543 = vmatpush.msra.mxu3 %v292_v35 }
  0x34   :  { %v224_v37 = vld [vmem:[#allocation5 + $0x4c0] sm:$0xff]  ;;  %475 = vmatpush.msra.mxu0 %v96_v36  ;;  %v97_v36 = vld [vmem:[#allocation5 + $0xc8] sm:$0xff] }
  0x35   :  { %v160_v38 = vld [vmem:[#allocation5 + $0x2c0] sm:$0xff]  ;;  %521 = vmatpush.msra.mxu2 %v224_v37  ;;  %v165_v37 = vld [vmem:[#allocation5 + $0x2e8] sm:$0xff] }
  0x36   :  { %v288_v39 = vld [vmem:[#allocation5 + $0x6c0] sm:$0xff]  ;;  %498 = vmatpush.msra.mxu1 %v160_v38 }
  0x37   :  { %v92_v40 = vld [vmem:[#allocation5 + $0xa0] sm:$0xff]  ;;  %544 = vmatpush.msra.mxu3 %v288_v39 }
  0x38   :  { %v220_v41 = vld [vmem:[#allocation5 + $0x4a0] sm:$0xff]  ;;  %476 = vmatpush.msra.mxu0 %v92_v40  ;;  %v93_v40 = vld [vmem:[#allocation5 + $0xa8] sm:$0xff] }
  0x39   :  { %v156_v42 = vld [vmem:[#allocation5 + $0x2a0] sm:$0xff]  ;;  %522 = vmatpush.msra.mxu2 %v220_v41  ;;  %v161_v41 = vld [vmem:[#allocation5 + $0x2c8] sm:$0xff] }
  0x3a   :  { %v284_v43 = vld [vmem:[#allocation5 + $0x6a0] sm:$0xff]  ;;  %499 = vmatpush.msra.mxu1 %v156_v42 }
  0x3b   :  { %v88_v44 = vld [vmem:[#allocation5 + $0x80] sm:$0xff]  ;;  %545 = vmatpush.msra.mxu3 %v284_v43 }
  0x3c   :  { %v216_v45 = vld [vmem:[#allocation5 + $0x480] sm:$0xff]  ;;  %477 = vmatpush.msra.mxu0 %v88_v44  ;;  %v89_v44 = vld [vmem:[#allocation5 + $0x88] sm:$0xff] }
  0x3d   :  { %v152_v46 = vld [vmem:[#allocation5 + $0x280] sm:$0xff]  ;;  %523 = vmatpush.msra.mxu2 %v216_v45  ;;  %v157_v45 = vld [vmem:[#allocation5 + $0x2a8] sm:$0xff] }
  0x3e   :  { %v280_v47 = vld [vmem:[#allocation5 + $0x680] sm:$0xff]  ;;  %500 = vmatpush.msra.mxu1 %v152_v46 }
  0x3f   :  { %v84_v48 = vld [vmem:[#allocation5 + $0x60] sm:$0xff]  ;;  %546 = vmatpush.msra.mxu3 %v280_v47 }
  0x40   :  { %v212_v49 = vld [vmem:[#allocation5 + $0x460] sm:$0xff]  ;;  %478 = vmatpush.msra.mxu0 %v84_v48  ;;  %v85_v48 = vld [vmem:[#allocation5 + $0x68] sm:$0xff] }
  0x41   :  { %v148_v50 = vld [vmem:[#allocation5 + $0x260] sm:$0xff]  ;;  %524 = vmatpush.msra.mxu2 %v212_v49  ;;  %v153_v49 = vld [vmem:[#allocation5 + $0x288] sm:$0xff] }
  0x42   :  { %v276_v51 = vld [vmem:[#allocation5 + $0x660] sm:$0xff]  ;;  %501 = vmatpush.msra.mxu1 %v148_v50 }
  0x43   :  { %v80_v52 = vld [vmem:[#allocation5 + $0x40] sm:$0xff]  ;;  %547 = vmatpush.msra.mxu3 %v276_v51 }
  0x44   :  { %v208_v53 = vld [vmem:[#allocation5 + $0x440] sm:$0xff]  ;;  %479 = vmatpush.msra.mxu0 %v80_v52 }
  0x45   :  { %v144_v54 = vld [vmem:[#allocation5 + $0x240] sm:$0xff]  ;;  %525 = vmatpush.msra.mxu2 %v208_v53  ;;  %v81_v53 = vld [vmem:[#allocation5 + $0x48] sm:$0xff] }
  0x46   :  { %v272_v55 = vld [vmem:[#allocation5 + $0x640] sm:$0xff]  ;;  %502 = vmatpush.msra.mxu1 %v144_v54  ;;  %v149_v54 = vld [vmem:[#allocation5 + $0x268] sm:$0xff] }
  0x47   :  { %v76_v56 = vld [vmem:[#allocation5 + $0x20] sm:$0xff]  ;;  %548 = vmatpush.msra.mxu3 %v272_v55  ;;  %v1207_v55 = vld [vmem:[#allocation2 + $0x8] sm:$0xff] }
  0x48   :  { %v204_v57 = vld [vmem:[#allocation5 + $0x420] sm:$0xff]  ;;  %480 = vmatpush.msra.mxu0 %v76_v56 }
  0x49   :  { %v140_v58 = vld [vmem:[#allocation5 + $0x220] sm:$0xff]  ;;  %526 = vmatpush.msra.mxu2 %v204_v57 }
  0x4a   :  { %v268_v59 = vld [vmem:[#allocation5 + $0x620] sm:$0xff]  ;;  %503 = vmatpush.msra.mxu1 %v140_v58  ;;  %v77_v58 = vld [vmem:[#allocation5 + $0x28] sm:$0xff] }
  0x4b   :  { %v72_v60 = vld [vmem:[#allocation5] sm:$0xff]  ;;  %549 = vmatpush.msra.mxu3 %v268_v59  ;;  %v145_v59 = vld [vmem:[#allocation5 + $0x248] sm:$0xff] }
  0x4c   :  { %v200_v61 = vld [vmem:[#allocation5 + $0x400] sm:$0xff]  ;;  %481 = vmatpush.msra.mxu0 %v72_v60 }
  0x4d   :  { %v388_v62 = vld [vmem:[#allocation5 + $0x9e0] sm:$0xff]  ;;  %527 = vmatpush.msra.mxu2 %v200_v61 }
  0x4e   :  { %v136_v0 = vld [vmem:[#allocation5 + $0x200] sm:$0xff]  ;;  %558 = vmatpush.msrb.mxu0 %v388_v62  ;;  %v73_v62 = vld [vmem:[#allocation5 + $0x8] sm:$0xff] }
  0x4f   :  { %v264_v1 = vld [vmem:[#allocation5 + $0x600] sm:$0xff]  ;;  %604 = vmatpush.msrb.mxu2 %v133_v63  ;;  %504 = vmatpush.msra.mxu1 %v136_v0  ;;  %v141_v63 = vld [vmem:[#allocation5 + $0x228] sm:$0xff]  ;;  %v1211_v0 = vld [vmem:[#allocation2 + $0x10] sm:$0xff] }
  0x50   :  { %v384_v2 = vld [vmem:[#allocation5 + $0x9c0] sm:$0xff]  ;;  %550 = vmatpush.msra.mxu3 %v264_v1  ;;  %505 = vmatmul.f32.vlgmr.msra.gmra.mxu1 %v1207_v55  ;;  %v261_v1 = vld [vmem:[#allocation5 + $0x5e8] sm:$0xff] }
  0x51   :  { %v452_v3 = vld [vmem:[#allocation5 + $0xbe0] sm:$0xff]  ;;  %559 = vmatpush.msrb.mxu0 %v384_v2  ;;  %605 = vmatpush.msrb.mxu2 %v129_v4  ;;  %v389_v2 = vld [vmem:[#allocation5 + $0x9e8] sm:$0xff] }
  0x52   :  { %v380_v6 = vld [vmem:[#allocation5 + $0x9a0] sm:$0xff]  ;;  %581 = vmatpush.msrb.mxu1 %v452_v3  ;;  %627 = vmatpush.msrb.mxu3 %v197_v5  ;;  %v137_v4 = vld [vmem:[#allocation5 + $0x208] sm:$0xff]  ;;  %v1213_v5 = vld [vmem:[#allocation2 + $0x30] sm:$0xff] }
  0x53   :  { %v448_v7 = vld [vmem:[#allocation5 + $0xbc0] sm:$0xff]  ;;  %560 = vmatpush.msrb.mxu0 %v380_v6  ;;  %606 = vmatpush.msrb.mxu2 %v125_v8  ;;  %v1216_v6 = vld [vmem:[#allocation2 + $0x18] sm:$0xff]  ;;  %v325_v8 = vld [vmem:[#allocation5 + $0x7e8] sm:$0xff] }
  0x54   :  { %v376_v10 = vld [vmem:[#allocation5 + $0x980] sm:$0xff]  ;;  %582 = vmatpush.msrb.mxu1 %v448_v7  ;;  %628 = vmatpush.msrb.mxu3 %v193_v9  ;;  %v257_v7 = vld [vmem:[#allocation5 + $0x5c8] sm:$0xff] }
  0x55   :  { %v444_v11 = vld [vmem:[#allocation5 + $0xba0] sm:$0xff]  ;;  %561 = vmatpush.msrb.mxu0 %v376_v10  ;;  %607 = vmatpush.msrb.mxu2 %v121_v12  ;;  %v385_v9 = vld [vmem:[#allocation5 + $0x9c8] sm:$0xff] }
  0x56   :  { %v372_v14 = vld [vmem:[#allocation5 + $0x960] sm:$0xff]  ;;  %583 = vmatpush.msrb.mxu1 %v444_v11  ;;  %629 = vmatpush.msrb.mxu3 %v189_v13  ;;  %v453_v10 = vld [vmem:[#allocation5 + $0xbe8] sm:$0xff]  ;;  %v1219_v11 = vld [vmem:[#allocation2 + $0x38] sm:$0xff] }
  0x57   :  { %v440_v15 = vld [vmem:[#allocation5 + $0xb80] sm:$0xff]  ;;  %562 = vmatpush.msrb.mxu0 %v372_v14  ;;  %608 = vmatpush.msrb.mxu2 %v117_v16  ;;  %v253_v12 = vld [vmem:[#allocation5 + $0x5a8] sm:$0xff] }
  0x58   :  { %v368_v18 = vld [vmem:[#allocation5 + $0x940] sm:$0xff]  ;;  %584 = vmatpush.msrb.mxu1 %v440_v15  ;;  %630 = vmatpush.msrb.mxu3 %v185_v17  ;;  %v321_v13 = vld [vmem:[#allocation5 + $0x7c8] sm:$0xff] }
  0x59   :  { %v436_v19 = vld [vmem:[#allocation5 + $0xb60] sm:$0xff]  ;;  %563 = vmatpush.msrb.mxu0 %v368_v18  ;;  %609 = vmatpush.msrb.mxu2 %v113_v20  ;;  %v381_v14 = vld [vmem:[#allocation5 + $0x9a8] sm:$0xff] }
  0x5a   :  { %v364_v22 = vld [vmem:[#allocation5 + $0x920] sm:$0xff]  ;;  %585 = vmatpush.msrb.mxu1 %v436_v19  ;;  %631 = vmatpush.msrb.mxu3 %v181_v21  ;;  %v449_v15 = vld [vmem:[#allocation5 + $0xbc8] sm:$0xff] }
  0x5b   :  { %v432_v23 = vld [vmem:[#allocation5 + $0xb40] sm:$0xff]  ;;  %564 = vmatpush.msrb.mxu0 %v364_v22  ;;  %610 = vmatpush.msrb.mxu2 %v109_v24  ;;  %v249_v16 = vld [vmem:[#allocation5 + $0x588] sm:$0xff] }
  0x5c   :  { %v360_v26 = vld [vmem:[#allocation5 + $0x900] sm:$0xff]  ;;  %586 = vmatpush.msrb.mxu1 %v432_v23  ;;  %632 = vmatpush.msrb.mxu3 %v177_v25  ;;  %v317_v17 = vld [vmem:[#allocation5 + $0x7a8] sm:$0xff] }
  0x5d   :  { %v428_v27 = vld [vmem:[#allocation5 + $0xb20] sm:$0xff]  ;;  %565 = vmatpush.msrb.mxu0 %v360_v26  ;;  %611 = vmatpush.msrb.mxu2 %v105_v28  ;;  %v377_v18 = vld [vmem:[#allocation5 + $0x988] sm:$0xff] }
  0x5e   :  { %v356_v30 = vld [vmem:[#allocation5 + $0x8e0] sm:$0xff]  ;;  %587 = vmatpush.msrb.mxu1 %v428_v27  ;;  %633 = vmatpush.msrb.mxu3 %v173_v29  ;;  %v445_v19 = vld [vmem:[#allocation5 + $0xba8] sm:$0xff] }
  0x5f   :  { %v424_v31 = vld [vmem:[#allocation5 + $0xb00] sm:$0xff]  ;;  %566 = vmatpush.msrb.mxu0 %v356_v30  ;;  %612 = vmatpush.msrb.mxu2 %v101_v32  ;;  %v245_v20 = vld [vmem:[#allocation5 + $0x568] sm:$0xff] }
  0x60   :  { %v352_v34 = vld [vmem:[#allocation5 + $0x8c0] sm:$0xff]  ;;  %588 = vmatpush.msrb.mxu1 %v424_v31  ;;  %634 = vmatpush.msrb.mxu3 %v169_v33  ;;  %v313_v21 = vld [vmem:[#allocation5 + $0x788] sm:$0xff] }
  0x61   :  { %v420_v35 = vld [vmem:[#allocation5 + $0xae0] sm:$0xff]  ;;  %567 = vmatpush.msrb.mxu0 %v352_v34  ;;  %613 = vmatpush.msrb.mxu2 %v97_v36  ;;  %v373_v22 = vld [vmem:[#allocation5 + $0x968] sm:$0xff] }
  0x62   :  { %v348_v38 = vld [vmem:[#allocation5 + $0x8a0] sm:$0xff]  ;;  %589 = vmatpush.msrb.mxu1 %v420_v35  ;;  %635 = vmatpush.msrb.mxu3 %v165_v37  ;;  %v441_v23 = vld [vmem:[#allocation5 + $0xb88] sm:$0xff] }
  0x63   :  { %v416_v39 = vld [vmem:[#allocation5 + $0xac0] sm:$0xff]  ;;  %568 = vmatpush.msrb.mxu0 %v348_v38  ;;  %614 = vmatpush.msrb.mxu2 %v93_v40  ;;  %v309_v25 = vld [vmem:[#allocation5 + $0x768] sm:$0xff] }
  0x64   :  { %v344_v42 = vld [vmem:[#allocation5 + $0x880] sm:$0xff]  ;;  %590 = vmatpush.msrb.mxu1 %v416_v39  ;;  %636 = vmatpush.msrb.mxu3 %v161_v41  ;;  %v241_v26 = vld [vmem:[#allocation5 + $0x548] sm:$0xff] }
  0x65   :  { %v412_v43 = vld [vmem:[#allocation5 + $0xaa0] sm:$0xff]  ;;  %569 = vmatpush.msrb.mxu0 %v344_v42  ;;  %615 = vmatpush.msrb.mxu2 %v89_v44  ;;  %v369_v27 = vld [vmem:[#allocation5 + $0x948] sm:$0xff] }
  0x66   :  { %v340_v46 = vld [vmem:[#allocation5 + $0x860] sm:$0xff]  ;;  %591 = vmatpush.msrb.mxu1 %v412_v43  ;;  %637 = vmatpush.msrb.mxu3 %v157_v45  ;;  %v437_v28 = vld [vmem:[#allocation5 + $0xb68] sm:$0xff] }
  0x67   :  { %v408_v47 = vld [vmem:[#allocation5 + $0xa80] sm:$0xff]  ;;  %570 = vmatpush.msrb.mxu0 %v340_v46  ;;  %616 = vmatpush.msrb.mxu2 %v85_v48  ;;  %v1225_v29 = vld [vmem:[#allocation2 + $0x28] sm:$0xff] }
  0x68   :  { %v1205_v50 = vld [vmem:[#allocation2] sm:$0xff]  ;;  %592 = vmatpush.msrb.mxu1 %v408_v47  ;;  %638 = vmatpush.msrb.mxu3 %v153_v49  ;;  %v237_v30 = vld [vmem:[#allocation5 + $0x528] sm:$0xff] }
  0x69   :  { %v404_v51 = vld [vmem:[#allocation5 + $0xa60] sm:$0xff]  ;;  %482 = vmatmul.f32.vlgmr.msra.gmra.mxu0 %v1205_v50  ;;  %617 = vmatpush.msrb.mxu2 %v81_v53  ;;  %v305_v31 = vld [vmem:[#allocation5 + $0x748] sm:$0xff] }
  0x6a   :  { %v336_v52 = vld [vmem:[#allocation5 + $0x840] sm:$0xff]  ;;  %593 = vmatpush.msrb.mxu1 %v404_v51  ;;  %639 = vmatpush.msrb.mxu3 %v149_v54  ;;  %v365_v32 = vld [vmem:[#allocation5 + $0x928] sm:$0xff] }
  0x6b   :  { %v332_v56 = vld [vmem:[#allocation5 + $0x820] sm:$0xff]  ;;  %571 = vmatpush.msrb.mxu0 %v336_v52  ;;  %618 = vmatpush.msrb.mxu2 %v77_v58  ;;  %v433_v33 = vld [vmem:[#allocation5 + $0xb48] sm:$0xff] }
  0x6c   :  { %v400_v57 = vld [vmem:[#allocation5 + $0xa40] sm:$0xff]  ;;  %640 = vmatpush.msrb.mxu3 %v145_v59  ;;  %528 = vmatmul.f32.vlgmr.msra.gmra.mxu2 %v1211_v0  ;;  %v233_v34 = vld [vmem:[#allocation5 + $0x508] sm:$0xff] }
  0x6d   :  { %v328_v60 = vld [vmem:[#allocation5 + $0x800] sm:$0xff]  ;;  %572 = vmatpush.msrb.mxu0 %v332_v56  ;;  %594 = vmatpush.msrb.mxu1 %v400_v57  ;;  %v301_v35 = vld [vmem:[#allocation5 + $0x728] sm:$0xff] }
  0x6e   :  { %v396_v61 = vld [vmem:[#allocation5 + $0xa20] sm:$0xff]  ;;  %619 = vmatpush.msrb.mxu2 %v73_v62  ;;  %641 = vmatpush.msrb.mxu3 %v141_v63  ;;  %v361_v36 = vld [vmem:[#allocation5 + $0x908] sm:$0xff] }
  0x6f   :  { %573 = vmatpush.msrb.mxu0 %v328_v60  ;;  %595 = vmatpush.msrb.mxu1 %v396_v61  ;;  %v392_v3 = vld [vmem:[#allocation5 + $0xa00] sm:$0xff]  ;;  %v429_v37 = vld [vmem:[#allocation5 + $0xb28] sm:$0xff] }
  0x70   :  { %696 = vmatpush.msra.mxu2 %v389_v2  ;;  %642 = vmatpush.msrb.mxu3 %v137_v4  ;;  %v1223_v24 = vld [vmem:[#allocation2 + $0x20] sm:$0xff]  ;;  %v229_v39 = vld [vmem:[#allocation5 + $0x4e8] sm:$0xff] }
  0x71   :  { %650 = vmatpush.msra.mxu0 %v261_v1  ;;  %596 = vmatpush.msrb.mxu1 %v392_v3  ;;  %v1229_v38 = vld [vmem:[#allocation2 + $0x40] sm:$0xff]  ;;  %v297_v40 = vld [vmem:[#allocation5 + $0x708] sm:$0xff] }
  0x72   :  { %485 = vmatmul.f32.gmra.mxu0 %v1213_v5  ;;  %551 = vmatmul.f32.vlgmr.msra.gmra.mxu3 %v1216_v6  ;;  %v357_v41 = vld [vmem:[#allocation5 + $0x8e8] sm:$0xff] }
  0x73   :  { %651 = vmatpush.msra.mxu0 %v257_v7  ;;  %673 = vmatpush.msra.mxu1 %v325_v8  ;;  %v425_v42 = vld [vmem:[#allocation5 + $0xb08] sm:$0xff] }
  0x74   :  { %697 = vmatpush.msra.mxu2 %v385_v9  ;;  %719 = vmatpush.msra.mxu3 %v453_v10  ;;  %v225_v43 = vld [vmem:[#allocation5 + $0x4c8] sm:$0xff] }
  0x75   :  { %508 = vmatmul.f32.gmra.mxu1 %v1219_v11  ;;  %652 = vmatpush.msra.mxu0 %v253_v12  ;;  %v1232_v44 = vld [vmem:[#allocation2 + $0x48] sm:$0xff] }
  0x76   :  { %674 = vmatpush.msra.mxu1 %v321_v13  ;;  %698 = vmatpush.msra.mxu2 %v381_v14  ;;  %v293_v45 = vld [vmem:[#allocation5 + $0x6e8] sm:$0xff]  ;;  %v134_v14 = vld [vmem:[#allocation5 + $0x1f0] sm:$0xff] }
  0x77   :  { %720 = vmatpush.msra.mxu3 %v449_v15  ;;  %653 = vmatpush.msra.mxu0 %v249_v16  ;;  %v353_v46 = vld [vmem:[#allocation5 + $0x8c8] sm:$0xff]  ;;  %v262_v15 = vld [vmem:[#allocation5 + $0x5f0] sm:$0xff] }
  0x78   :  { %675 = vmatpush.msra.mxu1 %v317_v17  ;;  %699 = vmatpush.msra.mxu2 %v377_v18  ;;  %v421_v47 = vld [vmem:[#allocation5 + $0xae8] sm:$0xff]  ;;  %v1237_v18 = vld [vmem:[#allocation2 + $0x50] sm:$0xff] }
  0x79   :  { %721 = vmatpush.msra.mxu3 %v445_v19  ;;  %654 = vmatpush.msra.mxu0 %v245_v20  ;;  %v221_v48 = vld [vmem:[#allocation5 + $0x4a8] sm:$0xff]  ;;  %v130_v19 = vld [vmem:[#allocation5 + $0x1d0] sm:$0xff] }
  0x7a   :  { %676 = vmatpush.msra.mxu1 %v313_v21  ;;  %700 = vmatpush.msra.mxu2 %v373_v22  ;;  %v289_v49 = vld [vmem:[#allocation5 + $0x6c8] sm:$0xff]  ;;  %v198_v20 = vld [vmem:[#allocation5 + $0x3f0] sm:$0xff] }
  0x7b   :  { %722 = vmatpush.msra.mxu3 %v441_v23  ;;  %574 = vmatmul.f32.vlgmr.msrb.gmra.mxu0 %v1223_v24  ;;  %v349_v51 = vld [vmem:[#allocation5 + $0x8a8] sm:$0xff]  ;;  %v258_v21 = vld [vmem:[#allocation5 + $0x5d0] sm:$0xff]  ;;  %v1241_v23 = vld [vmem:[#allocation2 + $0x58] sm:$0xff] }
  0x7c   :  { %677 = vmatpush.msra.mxu1 %v309_v25  ;;  %655 = vmatpush.msra.mxu0 %v241_v26  ;;  %v417_v52 = vld [vmem:[#allocation5 + $0xac8] sm:$0xff]  ;;  %v326_v22 = vld [vmem:[#allocation5 + $0x7f0] sm:$0xff] }
  0x7d   :  { %701 = vmatpush.msra.mxu2 %v369_v27  ;;  %723 = vmatpush.msra.mxu3 %v437_v28  ;;  %v217_v53 = vld [vmem:[#allocation5 + $0x488] sm:$0xff]  ;;  %v126_v25 = vld [vmem:[#allocation5 + $0x1b0] sm:$0xff] }
  0x7e   :  { %597 = vmatmul.f32.vlgmr.msrb.gmra.mxu1 %v1225_v29  ;;  %656 = vmatpush.msra.mxu0 %v237_v30  ;;  %v285_v54 = vld [vmem:[#allocation5 + $0x6a8] sm:$0xff]  ;;  %v194_v26 = vld [vmem:[#allocation5 + $0x3d0] sm:$0xff] }
  0x7f   :  { %678 = vmatpush.msra.mxu1 %v305_v31  ;;  %702 = vmatpush.msra.mxu2 %v365_v32  ;;  %v345_v56 = vld [vmem:[#allocation5 + $0x888] sm:$0xff]  ;;  %v254_v27 = vld [vmem:[#allocation5 + $0x5b0] sm:$0xff] }
  0x80   :  { %724 = vmatpush.msra.mxu3 %v433_v33  ;;  %657 = vmatpush.msra.mxu0 %v233_v34  ;;  %v413_v57 = vld [vmem:[#allocation5 + $0xaa8] sm:$0xff]  ;;  %v322_v28 = vld [vmem:[#allocation5 + $0x7d0] sm:$0xff] }
  0x81   :  { %679 = vmatpush.msra.mxu1 %v301_v35  ;;  %703 = vmatpush.msra.mxu2 %v361_v36  ;;  %v213_v58 = vld [vmem:[#allocation5 + $0x468] sm:$0xff]  ;;  %v122_v30 = vld [vmem:[#allocation5 + $0x190] sm:$0xff] }
  0x82   :  { %725 = vmatpush.msra.mxu3 %v429_v37  ;;  %531 = vmatmul.f32.gmra.mxu2 %v1229_v38  ;;  %v281_v59 = vld [vmem:[#allocation5 + $0x688] sm:$0xff]  ;;  %v190_v31 = vld [vmem:[#allocation5 + $0x3b0] sm:$0xff] }
  0x83   :  { %658 = vmatpush.msra.mxu0 %v229_v39  ;;  %680 = vmatpush.msra.mxu1 %v297_v40  ;;  %v341_v60 = vld [vmem:[#allocation5 + $0x868] sm:$0xff]  ;;  %v250_v32 = vld [vmem:[#allocation5 + $0x590] sm:$0xff] }
  0x84   :  { %704 = vmatpush.msra.mxu2 %v357_v41  ;;  %726 = vmatpush.msra.mxu3 %v425_v42  ;;  %v409_v61 = vld [vmem:[#allocation5 + $0xa88] sm:$0xff]  ;;  %v318_v33 = vld [vmem:[#allocation5 + $0x7b0] sm:$0xff] }
  0x85   :  { %659 = vmatpush.msra.mxu0 %v225_v43  ;;  %554 = vmatmul.f32.gmra.mxu3 %v1232_v44  ;;  %v209_v62 = vld [vmem:[#allocation5 + $0x448] sm:$0xff]  ;;  %v118_v34 = vld [vmem:[#allocation5 + $0x170] sm:$0xff] }
  0x86   :  { %681 = vmatpush.msra.mxu1 %v293_v45  ;;  %705 = vmatpush.msra.mxu2 %v353_v46  ;;  %v277_v63 = vld [vmem:[#allocation5 + $0x668] sm:$0xff]  ;;  %v186_v35 = vld [vmem:[#allocation5 + $0x390] sm:$0xff] }
  0x87   :  { %727 = vmatpush.msra.mxu3 %v421_v47  ;;  %660 = vmatpush.msra.mxu0 %v221_v48  ;;  %v337_v1 = vld [vmem:[#allocation5 + $0x848] sm:$0xff]  ;;  %v246_v36 = vld [vmem:[#allocation5 + $0x570] sm:$0xff] }
  0x88   :  { %682 = vmatpush.msra.mxu1 %v289_v49  ;;  %706 = vmatpush.msra.mxu2 %v349_v51  ;;  %v405_v2 = vld [vmem:[#allocation5 + $0xa68] sm:$0xff]  ;;  %v314_v37 = vld [vmem:[#allocation5 + $0x790] sm:$0xff] }
  0x89   :  { %728 = vmatpush.msra.mxu3 %v417_v52  ;;  %661 = vmatpush.msra.mxu0 %v217_v53  ;;  %v205_v3 = vld [vmem:[#allocation5 + $0x428] sm:$0xff]  ;;  %v114_v39 = vld [vmem:[#allocation5 + $0x150] sm:$0xff] }
  0x8a   :  { %683 = vmatpush.msra.mxu1 %v285_v54  ;;  %707 = vmatpush.msra.mxu2 %v345_v56  ;;  %v273_v4 = vld [vmem:[#allocation5 + $0x648] sm:$0xff]  ;;  %v182_v40 = vld [vmem:[#allocation5 + $0x370] sm:$0xff] }
  0x8b   :  { %729 = vmatpush.msra.mxu3 %v413_v57  ;;  %620 = vmatmul.f32.vlgmr.msrb.gmra.mxu2 %v1205_v50  ;;  %v333_v7 = vld [vmem:[#allocation5 + $0x828] sm:$0xff]  ;;  %v242_v41 = vld [vmem:[#allocation5 + $0x550] sm:$0xff] }
  0x8c   :  { %662 = vmatpush.msra.mxu0 %v213_v58  ;;  %684 = vmatpush.msra.mxu1 %v281_v59  ;;  %v401_v8 = vld [vmem:[#allocation5 + $0xa48] sm:$0xff]  ;;  %v310_v42 = vld [vmem:[#allocation5 + $0x770] sm:$0xff] }
  0x8d   :  { %708 = vmatpush.msra.mxu2 %v341_v60  ;;  %730 = vmatpush.msra.mxu3 %v409_v61  ;;  %v201_v9 = vld [vmem:[#allocation5 + $0x408] sm:$0xff]  ;;  %v110_v43 = vld [vmem:[#allocation5 + $0x130] sm:$0xff] }
  0x8e   :  { %663 = vmatpush.msra.mxu0 %v209_v62  ;;  %643 = vmatmul.f32.vlgmr.msrb.gmra.mxu3 %v1207_v55  ;;  %v269_v10 = vld [vmem:[#allocation5 + $0x628] sm:$0xff]  ;;  %v178_v45 = vld [vmem:[#allocation5 + $0x350] sm:$0xff] }
  0x8f   :  { %685 = vmatpush.msra.mxu1 %v277_v63  ;;  %709 = vmatpush.msra.mxu2 %v337_v1  ;;  %v329_v12 = vld [vmem:[#allocation5 + $0x808] sm:$0xff]  ;;  %v238_v46 = vld [vmem:[#allocation5 + $0x530] sm:$0xff] }
  0x90   :  { %731 = vmatpush.msra.mxu3 %v405_v2  ;;  %664 = vmatpush.msra.mxu0 %v205_v3  ;;  %v397_v13 = vld [vmem:[#allocation5 + $0xa28] sm:$0xff]  ;;  %v306_v47 = vld [vmem:[#allocation5 + $0x750] sm:$0xff] }
  0x91   :  { %686 = vmatpush.msra.mxu1 %v273_v4  ;;  %710 = vmatpush.msra.mxu2 %v333_v7  ;;  %v265_v16 = vld [vmem:[#allocation5 + $0x608] sm:$0xff]  ;;  %v106_v48 = vld [vmem:[#allocation5 + $0x110] sm:$0xff] }
  0x92   :  { %732 = vmatpush.msra.mxu3 %v401_v8  ;;  %665 = vmatpush.msra.mxu0 %v201_v9  ;;  %v393_v17 = vld [vmem:[#allocation5 + $0xa08] sm:$0xff]  ;;  %v174_v49 = vld [vmem:[#allocation5 + $0x330] sm:$0xff] }
  0x93   :  { %687 = vmatpush.msra.mxu1 %v269_v10  ;;  %711 = vmatpush.msra.mxu2 %v329_v12  ;;  %v234_v51 = vld [vmem:[#allocation5 + $0x510] sm:$0xff] }
  0x94   :  { %733 = vmatpush.msra.mxu3 %v397_v13  ;;  %623 = vmatmul.f32.gmra.mxu2 %v1213_v5  ;;  %v302_v52 = vld [vmem:[#allocation5 + $0x730] sm:$0xff] }
  0x95   :  { %742 = vmatpush.msrb.mxu0 %v134_v14  ;;  %788 = vmatpush.msrb.mxu2 %v262_v15  ;;  %v102_v53 = vld [vmem:[#allocation5 + $0xf0] sm:$0xff] }
  0x96   :  { %688 = vmatpush.msra.mxu1 %v265_v16  ;;  %734 = vmatpush.msra.mxu3 %v393_v17  ;;  %v170_v54 = vld [vmem:[#allocation5 + $0x310] sm:$0xff] }
  0x97   :  { %577 = vmatmul.f32.gmra.mxu0 %v1237_v18  ;;  %646 = vmatmul.f32.gmra.mxu3 %v1219_v11  ;;  %v230_v56 = vld [vmem:[#allocation5 + $0x4f0] sm:$0xff] }
  0x98   :  { %743 = vmatpush.msrb.mxu0 %v130_v19  ;;  %765 = vmatpush.msrb.mxu1 %v198_v20  ;;  %v298_v57 = vld [vmem:[#allocation5 + $0x710] sm:$0xff] }
  0x99   :  { %789 = vmatpush.msrb.mxu2 %v258_v21  ;;  %811 = vmatpush.msrb.mxu3 %v326_v22  ;;  %v98_v58 = vld [vmem:[#allocation5 + $0xd0] sm:$0xff] }
  0x9a   :  { %600 = vmatmul.f32.gmra.mxu1 %v1241_v23  ;;  %744 = vmatpush.msrb.mxu0 %v126_v25  ;;  %v166_v59 = vld [vmem:[#allocation5 + $0x2f0] sm:$0xff] }
  0x9b   :  { %766 = vmatpush.msrb.mxu1 %v194_v26  ;;  %790 = vmatpush.msrb.mxu2 %v254_v27  ;;  %v226_v60 = vld [vmem:[#allocation5 + $0x4d0] sm:$0xff] }
  0x9c   :  { %812 = vmatpush.msrb.mxu3 %v322_v28  ;;  %745 = vmatpush.msrb.mxu0 %v122_v30  ;;  %v294_v61 = vld [vmem:[#allocation5 + $0x6f0] sm:$0xff] }
  0x9d   :  { %767 = vmatpush.msrb.mxu1 %v190_v31  ;;  %791 = vmatpush.msrb.mxu2 %v250_v32  ;;  %v94_v62 = vld [vmem:[#allocation5 + $0xb0] sm:$0xff]  ;;  %v135_v31 = vld [vmem:[#allocation5 + $0x1f8] sm:$0xff] }
  0x9e   :  { %813 = vmatpush.msrb.mxu3 %v318_v33  ;;  %712 = vmatmul.f32.vlgmr.msra.gmra.mxu2 %v1223_v24  ;;  %v162_v63 = vld [vmem:[#allocation5 + $0x2d0] sm:$0xff] }
  0x9f   :  { %746 = vmatpush.msrb.mxu0 %v118_v34  ;;  %768 = vmatpush.msrb.mxu1 %v186_v35  ;;  %v222_v1 = vld [vmem:[#allocation5 + $0x4b0] sm:$0xff] }
  0xa0   :  { %792 = vmatpush.msrb.mxu2 %v246_v36  ;;  %814 = vmatpush.msrb.mxu3 %v314_v37  ;;  %v290_v2 = vld [vmem:[#allocation5 + $0x6d0] sm:$0xff]  ;;  %v131_v36 = vld [vmem:[#allocation5 + $0x1d8] sm:$0xff] }
  0xa1   :  { %666 = vmatmul.f32.vlgmr.msra.gmra.mxu0 %v1211_v0  ;;  %735 = vmatmul.f32.vlgmr.msra.gmra.mxu3 %v1225_v29  ;;  %v90_v3 = vld [vmem:[#allocation5 + $0x90] sm:$0xff]  ;;  %v199_v37 = vld [vmem:[#allocation5 + $0x3f8] sm:$0xff] }
  0xa2   :  { %747 = vmatpush.msrb.mxu0 %v114_v39  ;;  %769 = vmatpush.msrb.mxu1 %v182_v40  ;;  %v158_v4 = vld [vmem:[#allocation5 + $0x2b0] sm:$0xff] }
  0xa3   :  { %793 = vmatpush.msrb.mxu2 %v242_v41  ;;  %815 = vmatpush.msrb.mxu3 %v310_v42  ;;  %v218_v7 = vld [vmem:[#allocation5 + $0x490] sm:$0xff]  ;;  %v127_v41 = vld [vmem:[#allocation5 + $0x1b8] sm:$0xff] }
  0xa4   :  { %689 = vmatmul.f32.vlgmr.msra.gmra.mxu1 %v1216_v6  ;;  %748 = vmatpush.msrb.mxu0 %v110_v43  ;;  %v286_v8 = vld [vmem:[#allocation5 + $0x6b0] sm:$0xff]  ;;  %v195_v42 = vld [vmem:[#allocation5 + $0x3d8] sm:$0xff] }
  0xa5   :  { %770 = vmatpush.msrb.mxu1 %v178_v45  ;;  %794 = vmatpush.msrb.mxu2 %v238_v46  ;;  %v86_v9 = vld [vmem:[#allocation5 + $0x70] sm:$0xff]  ;;  %v123_v46 = vld [vmem:[#allocation5 + $0x198] sm:$0xff] }
  0xa6   :  { %816 = vmatpush.msrb.mxu3 %v306_v47  ;;  %749 = vmatpush.msrb.mxu0 %v106_v48  ;;  %v154_v10 = vld [vmem:[#allocation5 + $0x290] sm:$0xff]  ;;  %v191_v47 = vld [vmem:[#allocation5 + $0x3b8] sm:$0xff] }
  0xa7   :  { %771 = vmatpush.msrb.mxu1 %v174_v49  ;;  %795 = vmatpush.msrb.mxu2 %v234_v51  ;;  %v214_v12 = vld [vmem:[#allocation5 + $0x470] sm:$0xff]  ;;  %v119_v51 = vld [vmem:[#allocation5 + $0x178] sm:$0xff] }
  0xa8   :  { %817 = vmatpush.msrb.mxu3 %v302_v52  ;;  %750 = vmatpush.msrb.mxu0 %v102_v53  ;;  %v282_v13 = vld [vmem:[#allocation5 + $0x690] sm:$0xff]  ;;  %v187_v52 = vld [vmem:[#allocation5 + $0x398] sm:$0xff] }
  0xa9   :  { %772 = vmatpush.msrb.mxu1 %v170_v54  ;;  %796 = vmatpush.msrb.mxu2 %v230_v56  ;;  %v82_v14 = vld [vmem:[#allocation5 + $0x50] sm:$0xff]  ;;  %v115_v56 = vld [vmem:[#allocation5 + $0x158] sm:$0xff] }
  0xaa   :  { %818 = vmatpush.msrb.mxu3 %v298_v57  ;;  %751 = vmatpush.msrb.mxu0 %v98_v58  ;;  %v150_v15 = vld [vmem:[#allocation5 + $0x270] sm:$0xff]  ;;  %v183_v57 = vld [vmem:[#allocation5 + $0x378] sm:$0xff] }
  0xab   :  { %773 = vmatpush.msrb.mxu1 %v166_v59  ;;  %797 = vmatpush.msrb.mxu2 %v226_v60  ;;  %v210_v16 = vld [vmem:[#allocation5 + $0x450] sm:$0xff]  ;;  %v111_v60 = vld [vmem:[#allocation5 + $0x138] sm:$0xff] }
  0xac   :  { %819 = vmatpush.msrb.mxu3 %v294_v61  ;;  %752 = vmatpush.msrb.mxu0 %v94_v62  ;;  %v278_v17 = vld [vmem:[#allocation5 + $0x670] sm:$0xff]  ;;  %v179_v61 = vld [vmem:[#allocation5 + $0x358] sm:$0xff] }
  0xad   :  { %774 = vmatpush.msrb.mxu1 %v162_v63  ;;  %798 = vmatpush.msrb.mxu2 %v222_v1  ;;  %v78_v19 = vld [vmem:[#allocation5 + $0x30] sm:$0xff]  ;;  %v107_v1 = vld [vmem:[#allocation5 + $0x118] sm:$0xff] }
  0xae   :  { %820 = vmatpush.msrb.mxu3 %v290_v2  ;;  %753 = vmatpush.msrb.mxu0 %v90_v3  ;;  %v146_v20 = vld [vmem:[#allocation5 + $0x250] sm:$0xff]  ;;  %v175_v2 = vld [vmem:[#allocation5 + $0x338] sm:$0xff] }
  0xaf   :  { %775 = vmatpush.msrb.mxu1 %v158_v4  ;;  %799 = vmatpush.msrb.mxu2 %v218_v7  ;;  %v206_v21 = vld [vmem:[#allocation5 + $0x430] sm:$0xff]  ;;  %v103_v7 = vld [vmem:[#allocation5 + $0xf8] sm:$0xff] }
  0xb0   :  { %821 = vmatpush.msrb.mxu3 %v286_v8  ;;  %754 = vmatpush.msrb.mxu0 %v86_v9  ;;  %v274_v22 = vld [vmem:[#allocation5 + $0x650] sm:$0xff]  ;;  %v171_v8 = vld [vmem:[#allocation5 + $0x318] sm:$0xff] }
  0xb1   :  { %776 = vmatpush.msrb.mxu1 %v154_v10  ;;  %800 = vmatpush.msrb.mxu2 %v214_v12  ;;  %v74_v25 = vld [vmem:[#allocation5 + $0x10] sm:$0xff]  ;;  %v99_v12 = vld [vmem:[#allocation5 + $0xd8] sm:$0xff] }
  0xb2   :  { %822 = vmatpush.msrb.mxu3 %v282_v13  ;;  %755 = vmatpush.msrb.mxu0 %v82_v14  ;;  %v142_v26 = vld [vmem:[#allocation5 + $0x230] sm:$0xff]  ;;  %v167_v13 = vld [vmem:[#allocation5 + $0x2f8] sm:$0xff] }
  0xb3   :  { %777 = vmatpush.msrb.mxu1 %v150_v15  ;;  %801 = vmatpush.msrb.mxu2 %v210_v16  ;;  %v202_v27 = vld [vmem:[#allocation5 + $0x410] sm:$0xff]  ;;  %v95_v16 = vld [vmem:[#allocation5 + $0xb8] sm:$0xff] }
  0xb4   :  { %823 = vmatpush.msrb.mxu3 %v278_v17  ;;  %756 = vmatpush.msrb.mxu0 %v78_v19  ;;  %v270_v28 = vld [vmem:[#allocation5 + $0x630] sm:$0xff]  ;;  %v163_v17 = vld [vmem:[#allocation5 + $0x2d8] sm:$0xff] }
  0xb5   :  { %778 = vmatpush.msrb.mxu1 %v146_v20  ;;  %802 = vmatpush.msrb.mxu2 %v206_v21  ;;  %v390_v30 = vld [vmem:[#allocation5 + $0x9f0] sm:$0xff]  ;;  %v91_v21 = vld [vmem:[#allocation5 + $0x98] sm:$0xff] }
  0xb6   :  { %824 = vmatpush.msrb.mxu3 %v274_v22  ;;  %757 = vmatpush.msrb.mxu0 %v74_v25  ;;  %v138_v32 = vld [vmem:[#allocation5 + $0x210] sm:$0xff]  ;;  %v159_v22 = vld [vmem:[#allocation5 + $0x2b8] sm:$0xff] }
  0xb7   :  { %779 = vmatpush.msrb.mxu1 %v142_v26  ;;  %803 = vmatpush.msrb.mxu2 %v202_v27  ;;  %v266_v33 = vld [vmem:[#allocation5 + $0x610] sm:$0xff]  ;;  %v87_v27 = vld [vmem:[#allocation5 + $0x78] sm:$0xff] }
  0xb8   :  { %825 = vmatpush.msrb.mxu3 %v270_v28  ;;  %715 = vmatmul.f32.gmra.mxu2 %v1237_v18  ;;  %v386_v34 = vld [vmem:[#allocation5 + $0x9d0] sm:$0xff]  ;;  %v155_v28 = vld [vmem:[#allocation5 + $0x298] sm:$0xff] }
  0xb9   :  { %834 = vmatpush.msra.mxu0 %v390_v30  ;;  %880 = vmatpush.msra.mxu2 %v135_v31  ;;  %v454_v35 = vld [vmem:[#allocation5 + $0xbf0] sm:$0xff] }
  0xba   :  { %780 = vmatpush.msrb.mxu1 %v138_v32  ;;  %826 = vmatpush.msrb.mxu3 %v266_v33  ;;  %v382_v39 = vld [vmem:[#allocation5 + $0x9b0] sm:$0xff]  ;;  %v83_v32 = vld [vmem:[#allocation5 + $0x58] sm:$0xff] }
  0xbb   :  { %669 = vmatmul.f32.gmra.mxu0 %v1229_v38  ;;  %738 = vmatmul.f32.gmra.mxu3 %v1241_v23  ;;  %v450_v40 = vld [vmem:[#allocation5 + $0xbd0] sm:$0xff]  ;;  %v151_v33 = vld [vmem:[#allocation5 + $0x278] sm:$0xff] }
  0xbc   :  { %835 = vmatpush.msra.mxu0 %v386_v34  ;;  %857 = vmatpush.msra.mxu1 %v454_v35  ;;  %v378_v43 = vld [vmem:[#allocation5 + $0x990] sm:$0xff] }
  0xbd   :  { %881 = vmatpush.msra.mxu2 %v131_v36  ;;  %903 = vmatpush.msra.mxu3 %v199_v37  ;;  %v446_v45 = vld [vmem:[#allocation5 + $0xbb0] sm:$0xff]  ;;  %v79_v36 = vld [vmem:[#allocation5 + $0x38] sm:$0xff] }
  0xbe   :  { %692 = vmatmul.f32.gmra.mxu1 %v1232_v44  ;;  %836 = vmatpush.msra.mxu0 %v382_v39  ;;  %v374_v48 = vld [vmem:[#allocation5 + $0x970] sm:$0xff]  ;;  %v147_v37 = vld [vmem:[#allocation5 + $0x258] sm:$0xff] }
  0xbf   :  { %858 = vmatpush.msra.mxu1 %v450_v40  ;;  %882 = vmatpush.msra.mxu2 %v127_v41  ;;  %v442_v49 = vld [vmem:[#allocation5 + $0xb90] sm:$0xff]  ;;  %v75_v40 = vld [vmem:[#allocation5 + $0x18] sm:$0xff] }
  0xc0   :  { %904 = vmatpush.msra.mxu3 %v195_v42  ;;  %837 = vmatpush.msra.mxu0 %v378_v43  ;;  %v370_v53 = vld [vmem:[#allocation5 + $0x950] sm:$0xff]  ;;  %v143_v41 = vld [vmem:[#allocation5 + $0x238] sm:$0xff] }
  0xc1   :  { %859 = vmatpush.msra.mxu1 %v446_v45  ;;  %883 = vmatpush.msra.mxu2 %v123_v46  ;;  %v438_v54 = vld [vmem:[#allocation5 + $0xb70] sm:$0xff]  ;;  %v263_v42 = vld [vmem:[#allocation5 + $0x5f8] sm:$0xff] }
  0xc2   :  { %905 = vmatpush.msra.mxu3 %v191_v47  ;;  %838 = vmatpush.msra.mxu0 %v374_v48  ;;  %v366_v58 = vld [vmem:[#allocation5 + $0x930] sm:$0xff]  ;;  %v139_v45 = vld [vmem:[#allocation5 + $0x218] sm:$0xff] }
  0xc3   :  { %860 = vmatpush.msra.mxu1 %v442_v49  ;;  %884 = vmatpush.msra.mxu2 %v119_v51  ;;  %v434_v59 = vld [vmem:[#allocation5 + $0xb50] sm:$0xff]  ;;  %v259_v46 = vld [vmem:[#allocation5 + $0x5d8] sm:$0xff] }
  0xc4   :  { %906 = vmatpush.msra.mxu3 %v187_v52  ;;  %839 = vmatpush.msra.mxu0 %v370_v53  ;;  %v362_v62 = vld [vmem:[#allocation5 + $0x910] sm:$0xff]  ;;  %v327_v47 = vld [vmem:[#allocation5 + $0x7f8] sm:$0xff] }
  0xc5   :  { %861 = vmatpush.msra.mxu1 %v438_v54  ;;  %885 = vmatpush.msra.mxu2 %v115_v56  ;;  %v430_v63 = vld [vmem:[#allocation5 + $0xb30] sm:$0xff]  ;;  %v387_v48 = vld [vmem:[#allocation5 + $0x9d8] sm:$0xff] }
  0xc6   :  { %907 = vmatpush.msra.mxu3 %v183_v57  ;;  %840 = vmatpush.msra.mxu0 %v366_v58  ;;  %v358_v3 = vld [vmem:[#allocation5 + $0x8f0] sm:$0xff]  ;;  %v455_v49 = vld [vmem:[#allocation5 + $0xbf8] sm:$0xff] }
  0xc7   :  { %862 = vmatpush.msra.mxu1 %v434_v59  ;;  %886 = vmatpush.msra.mxu2 %v111_v60  ;;  %v426_v4 = vld [vmem:[#allocation5 + $0xb10] sm:$0xff]  ;;  %v323_v51 = vld [vmem:[#allocation5 + $0x7d8] sm:$0xff] }
  0xc8   :  { %908 = vmatpush.msra.mxu3 %v179_v61  ;;  %841 = vmatpush.msra.mxu0 %v362_v62  ;;  %v354_v9 = vld [vmem:[#allocation5 + $0x8d0] sm:$0xff]  ;;  %v383_v52 = vld [vmem:[#allocation5 + $0x9b8] sm:$0xff]  ;;  %v1259_v61 = vld [vmem:[#allocation7] sm:$0xf] }
  0xc9   :  { %863 = vmatpush.msra.mxu1 %v430_v63  ;;  %887 = vmatpush.msra.mxu2 %v107_v1  ;;  %v422_v10 = vld [vmem:[#allocation5 + $0xaf0] sm:$0xff]  ;;  %v451_v53 = vld [vmem:[#allocation5 + $0xbd8] sm:$0xff] }
  0xca   :  { %909 = vmatpush.msra.mxu3 %v175_v2  ;;  %842 = vmatpush.msra.mxu0 %v358_v3  ;;  %v350_v14 = vld [vmem:[#allocation5 + $0x8b0] sm:$0xff]  ;;  %v251_v54 = vld [vmem:[#allocation5 + $0x598] sm:$0xff]  ;;  %v458_v3 = vperm.slane %v1259_v61, 0 }
  0xcb   :  { %864 = vmatpush.msra.mxu1 %v426_v4  ;;  %888 = vmatpush.msra.mxu2 %v103_v7  ;;  %v418_v15 = vld [vmem:[#allocation5 + $0xad0] sm:$0xff]  ;;  %v319_v56 = vld [vmem:[#allocation5 + $0x7b8] sm:$0xff] }
  0xcc   :  { %910 = vmatpush.msra.mxu3 %v171_v8  ;;  %843 = vmatpush.msra.mxu0 %v354_v9  ;;  %v346_v19 = vld [vmem:[#allocation5 + $0x890] sm:$0xff]  ;;  %v447_v57 = vld [vmem:[#allocation5 + $0xbb8] sm:$0xff] }
  0xcd   :  { %865 = vmatpush.msra.mxu1 %v422_v10  ;;  %889 = vmatpush.msra.mxu2 %v99_v12  ;;  %v414_v20 = vld [vmem:[#allocation5 + $0xab0] sm:$0xff]  ;;  %v315_v58 = vld [vmem:[#allocation5 + $0x798] sm:$0xff]  ;;  %v506_v4 = vpop.f32.mrf.mxu1 }
  0xce   :  { %911 = vmatpush.msra.mxu3 %v167_v13  ;;  %844 = vmatpush.msra.mxu0 %v350_v14  ;;  %v410_v25 = vld [vmem:[#allocation5 + $0xa90] sm:$0xff]  ;;  %v375_v59 = vld [vmem:[#allocation5 + $0x978] sm:$0xff] }
  0xcf   :  { %866 = vmatpush.msra.mxu1 %v418_v15  ;;  %890 = vmatpush.msra.mxu2 %v95_v16  ;;  %v342_v26 = vld [vmem:[#allocation5 + $0x870] sm:$0xff]  ;;  %v443_v60 = vld [vmem:[#allocation5 + $0xb98] sm:$0xff] }
  0xd0   :  { %912 = vmatpush.msra.mxu3 %v163_v17  ;;  %845 = vmatpush.msra.mxu0 %v346_v19  ;;  %v338_v30 = vld [vmem:[#allocation5 + $0x850] sm:$0xff]  ;;  %v311_v63 = vld [vmem:[#allocation5 + $0x778] sm:$0xff] }
  0xd1   :  { %867 = vmatpush.msra.mxu1 %v414_v20  ;;  %891 = vmatpush.msra.mxu2 %v91_v21  ;;  %v406_v31 = vld [vmem:[#allocation5 + $0xa70] sm:$0xff]  ;;  %v371_v1 = vld [vmem:[#allocation5 + $0x958] sm:$0xff]  ;;  %v1054_v20 = vld [vmem:[#allocation2] sm:$0xff] }
  0xd2   :  { %913 = vmatpush.msra.mxu3 %v159_v22  ;;  %758 = vmatmul.f32.vlgmr.msrb.gmra.mxu0 %v1205_v50  ;;  %v334_v34 = vld [vmem:[#allocation5 + $0x830] sm:$0xff]  ;;  %v439_v2 = vld [vmem:[#allocation5 + $0xb78] sm:$0xff] }
  0xd3   :  { %868 = vmatpush.msra.mxu1 %v410_v25  ;;  %846 = vmatpush.msra.mxu0 %v342_v26  ;;  %v402_v35 = vld [vmem:[#allocation5 + $0xa50] sm:$0xff]  ;;  %v239_v7 = vld [vmem:[#allocation5 + $0x538] sm:$0xff] }
  0xd4   :  { %892 = vmatpush.msra.mxu2 %v87_v27  ;;  %914 = vmatpush.msra.mxu3 %v155_v28  ;;  %v330_v39 = vld [vmem:[#allocation5 + $0x810] sm:$0xff]  ;;  %v307_v8 = vld [vmem:[#allocation5 + $0x758] sm:$0xff] }
  0xd5   :  { %781 = vmatmul.f32.vlgmr.msrb.gmra.mxu1 %v1207_v55  ;;  %847 = vmatpush.msra.mxu0 %v338_v30  ;;  %v398_v50 = vld [vmem:[#allocation5 + $0xa30] sm:$0xff]  ;;  %v391_v55 = vld [vmem:[#allocation5 + $0x9f8] sm:$0xff]  ;;  %v1055_v30 = vld [vmem:[#allocation2 + $0x8] sm:$0xff] }
  0xd6   :  { %869 = vmatpush.msra.mxu1 %v406_v31  ;;  %893 = vmatpush.msra.mxu2 %v83_v32  ;;  %v394_v43 = vld [vmem:[#allocation5 + $0xa10] sm:$0xff]  ;;  %v435_v9 = vld [vmem:[#allocation5 + $0xb58] sm:$0xff] }
  0xd7   :  { %915 = vmatpush.msra.mxu3 %v151_v33  ;;  %848 = vmatpush.msra.mxu0 %v334_v34  ;;  %v235_v10 = vld [vmem:[#allocation5 + $0x518] sm:$0xff] }
  0xd8   :  { %870 = vmatpush.msra.mxu1 %v402_v35  ;;  %894 = vmatpush.msra.mxu2 %v79_v36  ;;  %v303_v12 = vld [vmem:[#allocation5 + $0x738] sm:$0xff] }
  0xd9   :  { %916 = vmatpush.msra.mxu3 %v147_v37  ;;  %804 = vmatmul.f32.vlgmr.msrb.gmra.mxu2 %v1211_v0  ;;  %v255_v0 = vld [vmem:[#allocation5 + $0x5b8] sm:$0xff] }
  0xda   :  { %849 = vmatpush.msra.mxu0 %v330_v39  ;;  %871 = vmatpush.msra.mxu1 %v398_v50  ;;  %v431_v13 = vld [vmem:[#allocation5 + $0xb38] sm:$0xff] }
  0xdb   :  { %895 = vmatpush.msra.mxu2 %v75_v40  ;;  %917 = vmatpush.msra.mxu3 %v143_v41  ;;  %v231_v15 = vld [vmem:[#allocation5 + $0x4f8] sm:$0xff] }
  0xdc   :  { %926 = vmatpush.msrb.mxu0 %v263_v42  ;;  %827 = vmatmul.f32.vlgmr.msrb.gmra.mxu3 %v1216_v6  ;;  %v247_v6 = vld [vmem:[#allocation5 + $0x578] sm:$0xff] }
  0xdd   :  { %972 = vmatpush.msrb.mxu2 %v391_v55  ;;  %761 = vmatmul.f32.gmra.mxu0 %v1213_v5  ;;  %v379_v5 = vld [vmem:[#allocation5 + $0x998] sm:$0xff] }
  0xde   :  { %872 = vmatpush.msra.mxu1 %v394_v43  ;;  %918 = vmatpush.msra.mxu3 %v139_v45  ;;  %v299_v16 = vld [vmem:[#allocation5 + $0x718] sm:$0xff] }
  0xdf   :  { %927 = vmatpush.msrb.mxu0 %v259_v46  ;;  %973 = vmatpush.msrb.mxu2 %v387_v48  ;;  %v359_v17 = vld [vmem:[#allocation5 + $0x8f8] sm:$0xff] }
  0xe0   :  { %949 = vmatpush.msrb.mxu1 %v327_v47  ;;  %995 = vmatpush.msrb.mxu3 %v455_v49  ;;  %v427_v19 = vld [vmem:[#allocation5 + $0xb18] sm:$0xff]  ;;  %v1056_v49 = vld [vmem:[#allocation2 + $0x30] sm:$0xff] }
  0xe1   :  { %784 = vmatmul.f32.gmra.mxu1 %v1219_v11  ;;  %928 = vmatpush.msrb.mxu0 %v255_v0  ;;  %v243_v11 = vld [vmem:[#allocation5 + $0x558] sm:$0xff] }
  0xe2   :  { %950 = vmatpush.msrb.mxu1 %v323_v51  ;;  %974 = vmatpush.msrb.mxu2 %v383_v52  ;;  %v227_v21 = vld [vmem:[#allocation5 + $0x4d8] sm:$0xff] }
  0xe3   :  { %996 = vmatpush.msrb.mxu3 %v451_v53  ;;  %929 = vmatpush.msrb.mxu0 %v251_v54  ;;  %v295_v25 = vld [vmem:[#allocation5 + $0x6f8] sm:$0xff] }
  0xe4   :  { %951 = vmatpush.msrb.mxu1 %v319_v56  ;;  %975 = vmatpush.msrb.mxu2 %v379_v5  ;;  %v355_v26 = vld [vmem:[#allocation5 + $0x8d8] sm:$0xff] }
  0xe5   :  { %997 = vmatpush.msrb.mxu3 %v447_v57  ;;  %807 = vmatmul.f32.gmra.mxu2 %v1229_v38  ;;  %v367_v38 = vld [vmem:[#allocation5 + $0x938] sm:$0xff] }
  0xe6   :  { %930 = vmatpush.msrb.mxu0 %v247_v6  ;;  %v483_v62 = vpop.f32.mrf.mxu0  ;;  %952 = vmatpush.msrb.mxu1 %v315_v58  ;;  %v423_v27 = vld [vmem:[#allocation5 + $0xaf8] sm:$0xff] }
  0xe7   :  { %976 = vmatpush.msrb.mxu2 %v375_v59  ;;  %998 = vmatpush.msrb.mxu3 %v443_v60  ;;  %v484_v14 = vadd.f32 %v483_v62, %v458_v3  ;;  %v223_v31 = vld [vmem:[#allocation5 + $0x4b8] sm:$0xff] }
  0xe8   :  { %850 = vmatmul.f32.vlgmr.msra.gmra.mxu0 %v1223_v24  ;;  %830 = vmatmul.f32.gmra.mxu3 %v1232_v44  ;;  %v363_v24 = vld [vmem:[#allocation5 + $0x918] sm:$0xff] }
  0xe9   :  { %931 = vmatpush.msrb.mxu0 %v243_v11  ;;  %953 = vmatpush.msrb.mxu1 %v311_v63  ;;  %v507_v22 = vadd.f32 %v506_v4, %v484_v14  ;;  %v291_v32 = vld [vmem:[#allocation5 + $0x6d8] sm:$0xff]  ;;  %v1058_v4 = vld [vmem:[#allocation2 + $0x10] sm:$0xff] }
  0xea   :  { %977 = vmatpush.msrb.mxu2 %v371_v1  ;;  %999 = vmatpush.msrb.mxu3 %v439_v2  ;;  %v351_v34 = vld [vmem:[#allocation5 + $0x8b8] sm:$0xff] }
  0xeb   :  { %873 = vmatmul.f32.vlgmr.msra.gmra.mxu1 %v1225_v29  ;;  %932 = vmatpush.msrb.mxu0 %v239_v7  ;;  %v419_v35 = vld [vmem:[#allocation5 + $0xad8] sm:$0xff]  ;;  %v1059_v7 = vld [vmem:[#allocation2 + $0x20] sm:$0xff] }
  0xec   :  { %954 = vmatpush.msrb.mxu1 %v307_v8  ;;  %978 = vmatpush.msrb.mxu2 %v367_v38  ;;  %v219_v37 = vld [vmem:[#allocation5 + $0x498] sm:$0xff]  ;;  %v1061_v38 = vld [vmem:[#allocation2 + $0x28] sm:$0xff] }
  0xed   :  { %1000 = vmatpush.msrb.mxu3 %v435_v9  ;;  %933 = vmatpush.msrb.mxu0 %v235_v10  ;;  %v287_v39 = vld [vmem:[#allocation5 + $0x6b8] sm:$0xff] }
  0xee   :  { %955 = vmatpush.msrb.mxu1 %v303_v12  ;;  %979 = vmatpush.msrb.mxu2 %v363_v24  ;;  %v347_v50 = vld [vmem:[#allocation5 + $0x898] sm:$0xff] }
  0xef   :  { %1001 = vmatpush.msrb.mxu3 %v431_v13  ;;  %v1268_v29 = vpop.f32.mrf.mxu0  ;;  %896 = vmatmul.f32.vlgmr.msra.gmra.mxu2 %v1054_v20  ;;  %v529_v33 = vpop.f32.mrf.mxu2  ;;  %v415_v40 = vld [vmem:[#allocation5 + $0xab8] sm:$0xff]  ;;  %v1062_v13 = vld [vmem:[#allocation2 + $0x40] sm:$0xff] }
  0xf0   :  { %934 = vmatpush.msrb.mxu0 %v231_v15  ;;  %956 = vmatpush.msrb.mxu1 %v299_v16  ;;  %v530_v36 = vadd.f32 %v529_v33, %v507_v22  ;;  %v215_v42 = vld [vmem:[#allocation5 + $0x478] sm:$0xff]  ;;  %v487_v9 = vadd.f32 %v1268_v29, %v458_v3 }
  0xf1   :  { %980 = vmatpush.msrb.mxu2 %v359_v17  ;;  %1002 = vmatpush.msrb.mxu3 %v427_v19  ;;  %v283_v43 = vld [vmem:[#allocation5 + $0x698] sm:$0xff]  ;;  %v459_v19 = vperm.slane %v1259_v61, 1 }
  0xf2   :  { %853 = vmatmul.f32.gmra.mxu0 %v1237_v18  ;;  %v1271_v28 = vpop.f32.mrf.mxu1  ;;  %919 = vmatmul.f32.vlgmr.msra.gmra.mxu3 %v1055_v30  ;;  %v343_v45 = vld [vmem:[#allocation5 + $0x878] sm:$0xff] }
  0xf3   :  { %935 = vmatpush.msrb.mxu0 %v227_v21  ;;  %957 = vmatpush.msrb.mxu1 %v295_v25  ;;  %v411_v46 = vld [vmem:[#allocation5 + $0xa98] sm:$0xff]  ;;  %v510_v12 = vadd.f32 %v1271_v28, %v487_v9  ;;  %v461_v9 = vperm.slane %v1259_v61, 3 }
  0xf4   :  { %981 = vmatpush.msrb.mxu2 %v355_v26  ;;  %1003 = vmatpush.msrb.mxu3 %v423_v27  ;;  %v211_v47 = vld [vmem:[#allocation5 + $0x458] sm:$0xff] }
  0xf5   :  { %876 = vmatmul.f32.gmra.mxu1 %v1241_v23  ;;  %936 = vmatpush.msrb.mxu0 %v223_v31  ;;  %v552_v41 = vpop.f32.mrf.mxu3  ;;  %v279_v0 = vld [vmem:[#allocation5 + $0x678] sm:$0xff] }
  0xf6   :  { %958 = vmatpush.msrb.mxu1 %v291_v32  ;;  %982 = vmatpush.msrb.mxu2 %v351_v34  ;;  %v553_v55 = vadd.f32 %v552_v41, %v530_v36  ;;  %v339_v52 = vld [vmem:[#allocation5 + $0x858] sm:$0xff] }
  0xf7   :  { %1004 = vmatpush.msrb.mxu3 %v419_v35  ;;  %937 = vmatpush.msrb.mxu0 %v219_v37  ;;  %v407_v53 = vld [vmem:[#allocation5 + $0xa78] sm:$0xff] }
  0xf8   :  { %959 = vmatpush.msrb.mxu1 %v287_v39  ;;  %983 = vmatpush.msrb.mxu2 %v347_v50  ;;  %v575_v48 = vpop.f32.mrf.mxu0  ;;  %v207_v56 = vld [vmem:[#allocation5 + $0x438] sm:$0xff] }
  0xf9   :  { %1005 = vmatpush.msrb.mxu3 %v415_v40  ;;  %899 = vmatmul.f32.gmra.mxu2 %v1056_v49  ;;  %v576_v51 = vadd.f32 %v575_v48, %v553_v55  ;;  %v275_v5 = vld [vmem:[#allocation5 + $0x658] sm:$0xff] }
  0xfa   :  { %938 = vmatpush.msrb.mxu0 %v215_v42  ;;  %960 = vmatpush.msrb.mxu1 %v283_v43  ;;  %v1057_v6 = vld [vmem:[#allocation2 + $0x38] sm:$0xff] }
  0xfb   :  { %984 = vmatpush.msrb.mxu2 %v343_v45  ;;  %v598_v54 = vpop.f32.mrf.mxu1  ;;  %1006 = vmatpush.msrb.mxu3 %v411_v46  ;;  %v335_v58 = vld [vmem:[#allocation5 + $0x838] sm:$0xff]  ;;  %v460_v45 = vperm.slane %v1259_v61, 2 }
  0xfc   :  { %939 = vmatpush.msrb.mxu0 %v211_v47  ;;  %v599_v57 = vadd.f32 %v598_v54, %v576_v51  ;;  %922 = vmatmul.f32.gmra.mxu3 %v1057_v6  ;;  %v403_v59 = vld [vmem:[#allocation5 + $0xa58] sm:$0xff] }
  0xfd   :  { %961 = vmatpush.msrb.mxu1 %v279_v0  ;;  %985 = vmatpush.msrb.mxu2 %v339_v52  ;;  %v203_v60 = vld [vmem:[#allocation5 + $0x418] sm:$0xff] }
  0xfe   :  { %1007 = vmatpush.msrb.mxu3 %v407_v53  ;;  %v271_v11 = vld [vmem:[#allocation5 + $0x638] sm:$0xff]  ;;  %1018 = vst [vmem:[#allocation8] sm:$0xff] %v599_v57  ;;  %940 = vmatpush.msrb.mxu0 %v207_v56 }
  0xff   :  { %962 = vmatpush.msrb.mxu1 %v275_v5  ;;  %v331_v62 = vld [vmem:[#allocation5 + $0x818] sm:$0xff]  ;;  %986 = vmatpush.msrb.mxu2 %v335_v58 }
 0x100   :  { %v399_v63 = vld [vmem:[#allocation5 + $0xa38] sm:$0xff]  ;;  %1008 = vmatpush.msrb.mxu3 %v403_v59  ;;  %941 = vmatpush.msrb.mxu0 %v203_v60 }
 0x101   :  { %963 = vmatpush.msrb.mxu1 %v271_v11  ;;  %v267_v1 = vld [vmem:[#allocation5 + $0x618] sm:$0xff]  ;;  %987 = vmatpush.msrb.mxu2 %v331_v62 }
 0x102   :  { %v395_v2 = vld [vmem:[#allocation5 + $0xa18] sm:$0xff]  ;;  %1009 = vmatpush.msrb.mxu3 %v399_v63  ;;  %942 = vmatmul.f32.vlgmr.msrb.gmra.mxu0 %v1058_v4 }
 0x103   :  { %988 = vmatmul.f32.vlgmr.msrb.gmra.mxu2 %v1059_v7  ;;  %964 = vmatpush.msrb.mxu1 %v267_v1  ;;  %v1060_v8 = vld [vmem:[#allocation2 + $0x18] sm:$0xff] }
 0x104   :  { %1010 = vmatpush.msrb.mxu3 %v395_v2  ;;  %965 = vmatmul.f32.vlgmr.msrb.gmra.mxu1 %v1060_v8 }
 0x105   :  { %1011 = vmatmul.f32.vlgmr.msrb.gmra.mxu3 %v1061_v38  ;;  %v532_v10 = vpop.f32.mrf.mxu2 }
 0x106   :  { %v533_v14 = vadd.f32 %v532_v10, %v510_v12 }
 0x108   :  { %v555_v24 = vpop.f32.mrf.mxu3 }
 0x109   :  { %v556_v16 = vadd.f32 %v555_v24, %v533_v14 }
 0x10a   :  { %945 = vmatmul.f32.gmra.mxu0 %v1062_v13 }
 0x10b   :  { %991 = vmatmul.f32.gmra.mxu2 %v1237_v18 }
 0x10c   :  { %968 = vmatmul.f32.gmra.mxu1 %v1232_v44 }
 0x10d   :  { %1014 = vmatmul.f32.gmra.mxu3 %v1241_v23 }
 0x10e   :  { %v621_v15 = vpop.f32.mrf.mxu2 }
 0x10f   :  { %v622_v29 = vadd.f32 %v621_v15, %v459_v19 }
 0x111   :  { %v644_v17 = vpop.f32.mrf.mxu3 }
 0x112   :  { %v645_v26 = vadd.f32 %v644_v17, %v622_v29 }
 0x114   :  { %v578_v20 = vpop.f32.mrf.mxu0 }
 0x115   :  { %v579_v3 = vadd.f32 %v578_v20, %v556_v16 }
 0x117   :  { %v601_v21 = vpop.f32.mrf.mxu1  ;;  %v624_v25 = vpop.f32.mrf.mxu2 }
 0x118   :  { %v602_v22 = vadd.f32 %v601_v21, %v579_v3  ;;  %v625_v34 = vadd.f32 %v624_v25, %v459_v19 }
 0x11a   :  { %1022 = vst [vmem:[#allocation8 + $0x20] sm:$0xff] %v602_v22  ;;  %v647_v27 = vpop.f32.mrf.mxu3 }
 0x11b   :  { %v648_v35 = vadd.f32 %v647_v27, %v625_v34 }
 0x11e   :  { %v667_v18 = vpop.f32.mrf.mxu0 }
 0x11f   :  { %v668_v28 = vadd.f32 %v667_v18, %v645_v26 }
 0x121   :  { %v690_v44 = vpop.f32.mrf.mxu1  ;;  %v713_v23 = vpop.f32.mrf.mxu2 }
 0x122   :  { %v691_v30 = vadd.f32 %v690_v44, %v668_v28 }
 0x124   :  { %v714_v31 = vadd.f32 %v713_v23, %v691_v30  ;;  %v736_v32 = vpop.f32.mrf.mxu3 }
 0x126   :  { %v737_v33 = vadd.f32 %v736_v32, %v714_v31 }
 0x128   :  { %1019 = vst [vmem:[#allocation8 + $0x8] sm:$0xff] %v737_v33 }
 0x138   :  { %v670_v36 = vpop.f32.mrf.mxu0 }
 0x139   :  { %v671_v37 = vadd.f32 %v670_v36, %v648_v35 }
 0x13b   :  { %v693_v39 = vpop.f32.mrf.mxu1  ;;  %v716_v40 = vpop.f32.mrf.mxu2 }
 0x13c   :  { %v694_v50 = vadd.f32 %v693_v39, %v671_v37 }
 0x13e   :  { %v717_v41 = vadd.f32 %v716_v40, %v694_v50  ;;  %v739_v42 = vpop.f32.mrf.mxu3 }
 0x140   :  { %v740_v55 = vadd.f32 %v739_v42, %v717_v41 }
 0x142   :  { %1023 = vst [vmem:[#allocation8 + $0x28] sm:$0xff] %v740_v55 }
 0x14f   :  { %v759_v43 = vpop.f32.mrf.mxu0 }
 0x150   :  { %v760_v47 = vadd.f32 %v759_v43, %v460_v45 }
 0x152   :  { %v782_v46 = vpop.f32.mrf.mxu1 }
 0x153   :  { %v783_v48 = vadd.f32 %v782_v46, %v760_v47 }
 0x15a   :  { %v762_v49 = vpop.f32.mrf.mxu0 }
 0x15b   :  { %v763_v54 = vadd.f32 %v762_v49, %v460_v45 }
 0x15c   :  { %v805_v0 = vpop.f32.mrf.mxu2 }
 0x15d   :  { %v806_v52 = vadd.f32 %v805_v0, %v783_v48 }
 0x15e   :  { %v785_v51 = vpop.f32.mrf.mxu1 }
 0x15f   :  { %v828_v53 = vpop.f32.mrf.mxu3  ;;  %v786_v57 = vadd.f32 %v785_v51, %v763_v54 }
 0x160   :  { %v829_v56 = vadd.f32 %v828_v53, %v806_v52 }
 0x165   :  { %v851_v5 = vpop.f32.mrf.mxu0 }
 0x166   :  { %v852_v6 = vadd.f32 %v851_v5, %v829_v56 }
 0x168   :  { %v874_v58 = vpop.f32.mrf.mxu1  ;;  %v808_v60 = vpop.f32.mrf.mxu2 }
 0x169   :  { %v875_v59 = vadd.f32 %v874_v58, %v852_v6  ;;  %v809_v11 = vadd.f32 %v808_v60, %v786_v57 }
 0x16b   :  { %1020 = vst [vmem:[#allocation8 + $0x10] sm:$0xff] %v875_v59  ;;  %v831_v62 = vpop.f32.mrf.mxu3 }
 0x16c   :  { %v832_v63 = vadd.f32 %v831_v62, %v809_v11 }
 0x16f   :  { %v854_v1 = vpop.f32.mrf.mxu0 }
 0x170   :  { %v855_v2 = vadd.f32 %v854_v1, %v832_v63 }
 0x172   :  { %v877_v4 = vpop.f32.mrf.mxu1  ;;  %v897_v8 = vpop.f32.mrf.mxu2 }
 0x173   :  { %v878_v7 = vadd.f32 %v877_v4, %v855_v2  ;;  %v898_v10 = vadd.f32 %v897_v8, %v461_v9 }
 0x175   :  { %1024 = vst [vmem:[#allocation8 + $0x30] sm:$0xff] %v878_v7  ;;  %v920_v38 = vpop.f32.mrf.mxu3 }
 0x176   :  { %v921_v24 = vadd.f32 %v920_v38, %v898_v10 }
 0x17c   :  { %v900_v12 = vpop.f32.mrf.mxu2 }
 0x17d   :  { %v901_v17 = vadd.f32 %v900_v12, %v461_v9 }
 0x17f   :  { %v923_v13 = vpop.f32.mrf.mxu3  ;;  %v943_v14 = vpop.f32.mrf.mxu0 }
 0x180   :  { %v944_v15 = vadd.f32 %v943_v14, %v921_v24  ;;  %v924_v3 = vadd.f32 %v923_v13, %v901_v17 }
 0x181   :  { %v966_v16 = vpop.f32.mrf.mxu1 }
 0x182   :  { %v967_v19 = vadd.f32 %v966_v16, %v944_v15 }
 0x186   :  { %v989_v20 = vpop.f32.mrf.mxu2 }
 0x187   :  { %v990_v29 = vadd.f32 %v989_v20, %v967_v19  ;;  %v946_v21 = vpop.f32.mrf.mxu0 }
 0x188   :  { %v1012_v22 = vpop.f32.mrf.mxu3  ;;  %v947_v25 = vadd.f32 %v946_v21, %v924_v3 }
 0x189   :  { %v1013_v26 = vadd.f32 %v1012_v22, %v990_v29  ;;  %v969_v27 = vpop.f32.mrf.mxu1 }
 0x18a   :  { %v970_v18 = vadd.f32 %v969_v27, %v947_v25 }
 0x18b   :  { %1021 = vst [vmem:[#allocation8 + $0x18] sm:$0xff] %v1013_v26 }
 0x18e   :  { %v992_v61 = vpop.f32.mrf.mxu2 }
 0x18f   :  { %v993_v28 = vadd.f32 %v992_v61, %v970_v18 }
 0x190   :  { %v1015_v44 = vpop.f32.mrf.mxu3 }
 0x191   :  { %v1016_v30 = vadd.f32 %v1015_v44, %v993_v28 }
 0x193   :  { %1025 = vst [vmem:[#allocation8 + $0x38] sm:$0xff] %v1016_v30 }
 0x194   :  { %1038 = dma.vmem_to_hbm [thread:$0]  %s1031_s29, 1024, %s1033_s5, [#allocation4], %s1166_s20, %s1166_s20, %s1167_s21  }
 0x195   :  { %1163 = dma.done.wait [#allocation4], 1024  }
 0x196   :  { %1164 = vsyncadd [#allocation4], 4294966272 }
 0x197   :  { %1043 = vsyncpa [#allocation3], 1 }
 0x198   :  { %1044 = vsyncpa [#allocation6], 1 }
 0x199   :  { %1045 = vsyncpa [#allocation4], 1 }

</bundles_post_ra>
